<compile_context>
chip_gen: v7x
topology: tpu7x:2x2x1
jax: 0.10.0
libtpu: 0.0.40
codegen_flags: <defaults>
</compile_context>

<pallas_src>
import functools
import math

import jax
import jax.numpy as jnp
from jax import lax
from jax.experimental import pallas as pl
from jax.experimental.pallas import tpu as pltpu

VMEM = pltpu.MemorySpace.VMEM
SMEM = pltpu.MemorySpace.SMEM


def _vspec():
    return pl.BlockSpec(memory_space=VMEM)


# --------------------------- in-kernel helpers --------------------------------

def _erf_poly(x):
    # TODO(synk): exact erf has no guaranteed Mosaic lowering; use the
    # Abramowitz & Stegun 7.1.26 polynomial (max abs err ~1.5e-7) with exp (EUP).
    a1, a2, a3, a4, a5 = 0.254829592, -0.284496736, 1.421413741, -1.453152027, 1.061405429
    p = 0.3275911
    ax = jnp.abs(x)
    t = 1.0 / (1.0 + p * ax)
    poly = ((((a5 * t + a4) * t + a3) * t + a2) * t + a1) * t
    y = 1.0 - poly * jnp.exp(-ax * ax)
    return jnp.where(x >= 0, y, -y)


def _gelu_exact(x):
    return 0.5 * x * (1.0 + _erf_poly(x * (1.0 / math.sqrt(2.0))))


# --------------------------- fused Pallas kernel ------------------------------

def _han_fused_kernel(x_m_ref, x_d_ref, x_a_ref, x_skip_ref,
                      wq_ref, bq_ref,
                      wkv_d_ref, bkv_d_ref, wkv_a_ref, bkv_a_ref,
                      mask_dm_ref, mask_am_ref,
                      wo_ref, bo_ref, wl_ref, bl_ref,
                      alpha_ref, o_ref, *, heads, head_dim):
    f32 = jnp.float32
    H, D = heads, head_dim
    F = H * D

    x_m = x_m_ref[...]
    x_d = x_d_ref[...]
    x_a = x_a_ref[...]

    # Q projection for the destination type; packed K|V projections (fused
    # with the per-edge-type relation transforms, p_rel and 1/sqrt(D)) for
    # each source type — one wide matmul per source type.
    q = jnp.dot(x_m, wq_ref[...], preferred_element_type=f32) + bq_ref[...]        # [Nm, F]
    kv_d = jnp.dot(x_d, wkv_d_ref[...], preferred_element_type=f32) + bkv_d_ref[...]  # [Nd, 2F]
    kv_a = jnp.dot(x_a, wkv_a_ref[...], preferred_element_type=f32) + bkv_a_ref[...]  # [Na, 2F]
    k_dm, v_dm = kv_d[:, :F], kv_d[:, F:]
    k_am, v_am = kv_a[:, :F], kv_a[:, F:]

    mask_dm = mask_dm_ref[...]                          # [Nm, Nd]  (1.0 where edge)
    mask_am = mask_am_ref[...]                          # [Nm, Na]
    bias_dm = (mask_dm - 1.0) * 1e30                    # additive -inf-ish mask bias
    bias_am = (mask_am - 1.0) * 1e30

    nt = (((1,), (1,)), ((), ()))                       # contract last dims: q @ k.T

    # Per-head attention over the union of incoming edge groups; joint softmax
    # across both source types (exactly PyG's grouped scatter-softmax, since
    # the edge set is duplicate-free).
    heads_out = []
    for h in range(H):
        sl = slice(h * D, (h + 1) * D)
        qh = q[:, sl]                                                              # [Nm, D]
        s_dm = lax.dot_general(qh, k_dm[:, sl], nt, preferred_element_type=f32) + bias_dm
        s_am = lax.dot_general(qh, k_am[:, sl], nt, preferred_element_type=f32) + bias_am
        mx = jnp.maximum(jnp.max(s_dm, axis=-1, keepdims=True),
                         jnp.max(s_am, axis=-1, keepdims=True))
        p_dm = jnp.exp(s_dm - mx) * mask_dm
        p_am = jnp.exp(s_am - mx) * mask_am
        denom = (jnp.sum(p_dm, axis=-1, keepdims=True)
                 + jnp.sum(p_am, axis=-1, keepdims=True) + 1e-16)                  # PyG eps
        inv = pl.reciprocal(denom, approx=True)                                    # EUP slot
        o_h = (jnp.dot(p_dm, v_dm[:, sl], preferred_element_type=f32)
               + jnp.dot(p_am, v_am[:, sl], preferred_element_type=f32)) * inv     # [Nm, D]
        heads_out.append(o_h)
    agg = jnp.concatenate(heads_out, axis=-1)                                      # [Nm, F]

    # gelu (exact-erf form) + out_lin + skip-gate + classifier, all in-register.
    g = _gelu_exact(agg)
    y = jnp.dot(g, wo_ref[...], preferred_element_type=f32) + bo_ref[...]
    a = alpha_ref[0]                                                               # SMEM scalar
    h_out = a * y + (1.0 - a) * x_skip_ref[...]
    logits = jnp.dot(h_out, wl_ref[...], preferred_element_type=f32) + bl_ref[...]
    o_ref[...] = logits.astype(o_ref.dtype)                                        # [Nm, 128] lane-dense


# --------------------------- HAN forward (glue) -------------------------------

def init_params(key, in_ch, hidden, heads, num_classes, node_types, edge_types):
    D = hidden // heads
    keys = iter(jax.random.split(key, 128))

    def nrm(shape, scale=0.1):
        return (scale * jax.random.normal(next(keys), shape)).astype(jnp.float32)

    return {
        # HeteroDictLinear(in_ch -> 3*hidden): tensor_split order (k, q, v)
        'kqv': {nt: (nrm((3 * hidden, in_ch)), nrm((3 * hidden,)))
                for nt in node_types},
        # HeteroDictLinear(hidden -> hidden)  (a.k.a. out_lin)
        'out_lin': {nt: (nrm((hidden, hidden)), nrm((hidden,)))
                    for nt in node_types},
        'skip': {nt: nrm(()) for nt in node_types},
        # HeteroLinear per (edge_type, head): [H, D, D], no bias
        'k_rel': {et: nrm((heads, D, D)) for et in edge_types},
        'v_rel': {et: nrm((heads, D, D)) for et in edge_types},
        'p_rel': {et: (nrm((1, heads)) + 1.0) for et in edge_types},
        # final nn.Linear(hidden, num_classes)
        'lin': (nrm((num_classes, hidden)), nrm((num_classes,))),
    }


def han_forward(params, x_dict, masks_to_movie, hidden, heads):
    H, F = heads, hidden
    D = F // H
    C = x_dict['movie'].shape[-1]
    num_classes = params['lin'][0].shape[0]
    scale = 1.0 / math.sqrt(D)

    # --- weight-only preprocessing (done once per set of params) -------------
    w_kqv_m, b_kqv_m = params['kqv']['movie']
    wq = w_kqv_m[F:2 * F].T                                   # [C, F]
    bq = b_kqv_m[F:2 * F].reshape(1, F)

    def fold(et):
        # Fold kqv projection + per-head relation transform into one packed
        # [C, 2F] matrix per edge type (columns = K' | V'):
        #   k' = x @ (Wk^T @ BD_k) + bk @ BD_k   (p_rel and the 1/sqrt(D)
        #   logit scale folded into the K blocks; exact: logit is linear in k)
        #   v' = x @ (Wv^T @ BD_v) + bv @ BD_v
        src = et[0]
        w_src, b_src = params['kqv'][src]
        wk_s, bk_s = w_src[:F], b_src[:F]
        wv_s, bv_s = w_src[2 * F:], b_src[2 * F:]
        prel = params['p_rel'][et].reshape(H)
        bd_k = jax.scipy.linalg.block_diag(
            *[params['k_rel'][et][h] * (prel[h] * scale) for h in range(H)])
        bd_v = jax.scipy.linalg.block_diag(
            *[params['v_rel'][et][h] for h in range(H)])
        w = jnp.concatenate([wk_s.T @ bd_k, wv_s.T @ bd_v], axis=1)     # [C, 2F]
        b = jnp.concatenate([bk_s @ bd_k, bv_s @ bd_v]).reshape(1, 2 * F)
        return w, b

    et_dm = ('director', 'to', 'movie')
    et_am = ('actor', 'to', 'movie')
    wkv_d, bkv_d = fold(et_dm)                                # [C, 2F], [1, 2F]
    wkv_a, bkv_a = fold(et_am)

    w_o, b_o = params['out_lin']['movie']
    wo = w_o.T
    bo = b_o.reshape(1, F)

    # Lane-dense classifier: pad num_classes -> 128 columns, slice in wrapper.
    CP = 128
    w_l, b_l = params['lin']
    wl = jnp.zeros((F, CP), jnp.float32).at[:, :num_classes].set(w_l.T)
    bl = jnp.zeros((1, CP), jnp.float32).at[:, :num_classes].set(b_l)

    x_m = x_dict['movie']
    x_d = x_dict['director']
    x_a = x_dict['actor']
    mask_dm = masks_to_movie[et_dm].astype(jnp.float32)       # [Nm, Nd]
    mask_am = masks_to_movie[et_am].astype(jnp.float32)       # [Nm, Na]

    # Skip connection only applies when out_channels == in_channels (PyG rule).
    if F == C:
        alpha = jax.nn.sigmoid(params['skip']['movie']).reshape(1).astype(jnp.float32)
        x_skip = x_m
    else:
        alpha = jnp.ones((1,), jnp.float32)
        x_skip = jnp.zeros((x_m.shape[0], F), jnp.float32)

    n_movie = x_m.shape[0]
    kernel = functools.partial(_han_fused_kernel, heads=H, head_dim=D)

    out = pl.pallas_call(
        kernel,
        out_shape=jax.ShapeDtypeStruct((n_movie, CP), jnp.float32),
        in_specs=[_vspec()] * 16 + [pl.BlockSpec(memory_space=SMEM)],
        out_specs=_vspec(),
    )(x_m, x_d, x_a, x_skip, wq, bq, wkv_d, bkv_d, wkv_a, bkv_a,
      mask_dm, mask_am, wo, bo, wl, bl, alpha)

    return out[:, :num_classes]


# ------------------------------- main ------------------------------------------

if __name__ == "__main__":
    in_ch = hidden = 32
    heads = 4
    num_classes = 3
    n_movie, n_director, n_actor = 8, 4, 6

    node_types = ['movie', 'director', 'actor']
    edge_types = [('movie', 'to', 'director'), ('director', 'to', 'movie'),
                  ('movie', 'to', 'actor'), ('actor', 'to', 'movie')]

    key = jax.random.PRNGKey(0)
    k0, k1, k2, k3 = jax.random.split(key, 4)
    x_dict = {
        'movie': jax.random.normal(k0, (n_movie, in_ch), jnp.float32),
        'director': jax.random.normal(k1, (n_director, in_ch), jnp.float32),
        'actor': jax.random.normal(k2, (n_actor, in_ch), jnp.float32),
    }
    params = init_params(k3, in_ch, hidden, heads, num_classes,
                         node_types, edge_types)

    # Deterministic, duplicate-free edge_index_dict (PyG convention [src; dst]),
    # densified into per-edge-type adjacency masks [n_dst, n_src].
    mids = jnp.arange(n_movie)
    ei_dm = jnp.stack([mids % n_director, mids])                      # director->movie
    ei_am = jnp.stack([jnp.concatenate([mids % n_actor, (mids + 2) % n_actor]),
                       jnp.concatenate([mids, mids])])                # actor->movie

    def to_mask(ei, n_src, n_dst):
        m = jnp.zeros((n_dst, n_src), jnp.float32)
        return m.at[ei[1], ei[0]].set(1.0)

    masks_to_movie = {
        ('director', 'to', 'movie'): to_mask(ei_dm, n_director, n_movie),
        ('actor', 'to', 'movie'): to_mask(ei_am, n_actor, n_movie),
    }

    out = han_forward(params, x_dict, masks_to_movie, hidden, heads)
    out = jax.block_until_ready(out)
    assert out.shape == (n_movie, num_classes)
    assert bool(jnp.all(jnp.isfinite(out)))
    print("KERNEL_OK")
</pallas_src>

<mosaic_0001>
module attributes {stable_mosaic.version = 11 : i64} {
  func.func @_han_fused_kernel(%arg0: memref<8x32xf32, #tpu.memory_space<vmem>>, %arg1: memref<4x32xf32, #tpu.memory_space<vmem>>, %arg2: memref<6x32xf32, #tpu.memory_space<vmem>>, %arg3: memref<8x32xf32, #tpu.memory_space<vmem>>, %arg4: memref<32x32xf32, #tpu.memory_space<vmem>>, %arg5: memref<1x32xf32, #tpu.memory_space<vmem>>, %arg6: memref<32x64xf32, #tpu.memory_space<vmem>>, %arg7: memref<1x64xf32, #tpu.memory_space<vmem>>, %arg8: memref<32x64xf32, #tpu.memory_space<vmem>>, %arg9: memref<1x64xf32, #tpu.memory_space<vmem>>, %arg10: memref<8x4xf32, #tpu.memory_space<vmem>>, %arg11: memref<8x6xf32, #tpu.memory_space<vmem>>, %arg12: memref<32x32xf32, #tpu.memory_space<vmem>>, %arg13: memref<1x32xf32, #tpu.memory_space<vmem>>, %arg14: memref<32x128xf32, #tpu.memory_space<vmem>>, %arg15: memref<1x128xf32, #tpu.memory_space<vmem>>, %arg16: memref<1xf32, #tpu.memory_space<smem>>, %arg17: memref<8x128xf32, #tpu.memory_space<vmem>>) attributes {dimension_semantics = [], scalar_prefetch = 0 : i64, scratch_operands = 0 : i64, tpu.core_type = #tpu.core_type<tc>} {
    %c0 = arith.constant 0 : index
    %c0_0 = arith.constant 0 : index
    %0 = vector.load %arg0[%c0, %c0_0] : memref<8x32xf32, #tpu.memory_space<vmem>>, vector<8x32xf32>
    %c0_1 = arith.constant 0 : index
    %c0_2 = arith.constant 0 : index
    %1 = vector.load %arg1[%c0_1, %c0_2] : memref<4x32xf32, #tpu.memory_space<vmem>>, vector<4x32xf32>
    %c0_3 = arith.constant 0 : index
    %c0_4 = arith.constant 0 : index
    %2 = vector.load %arg2[%c0_3, %c0_4] : memref<6x32xf32, #tpu.memory_space<vmem>>, vector<6x32xf32>
    %c0_5 = arith.constant 0 : index
    %c0_6 = arith.constant 0 : index
    %3 = vector.load %arg4[%c0_5, %c0_6] : memref<32x32xf32, #tpu.memory_space<vmem>>, vector<32x32xf32>
    %cst = arith.constant dense<0.000000e+00> : vector<8x32xf32>
    %4 = tpu.matmul %0, %3, %cst {dimension_numbers = #tpu.dot_dimension_numbers<[1], [0], [0], [1], [0, 0, 1, 1], [], []>} : vector<8x32xf32>, vector<32x32xf32>, vector<8x32xf32> -> vector<8x32xf32>
    %c0_7 = arith.constant 0 : index
    %c0_8 = arith.constant 0 : index
    %5 = vector.load %arg5[%c0_7, %c0_8] : memref<1x32xf32, #tpu.memory_space<vmem>>, vector<1x32xf32>
    %6 = vector.broadcast %5 : vector<1x32xf32> to vector<8x32xf32>
    %7 = arith.addf %4, %6 : vector<8x32xf32>
    %c0_9 = arith.constant 0 : index
    %c0_10 = arith.constant 0 : index
    %8 = vector.load %arg6[%c0_9, %c0_10] : memref<32x64xf32, #tpu.memory_space<vmem>>, vector<32x64xf32>
    %cst_11 = arith.constant dense<0.000000e+00> : vector<4x64xf32>
    %9 = tpu.matmul %1, %8, %cst_11 {dimension_numbers = #tpu.dot_dimension_numbers<[1], [0], [0], [1], [0, 0, 1, 1], [], []>} : vector<4x32xf32>, vector<32x64xf32>, vector<4x64xf32> -> vector<4x64xf32>
    %c0_12 = arith.constant 0 : index
    %c0_13 = arith.constant 0 : index
    %10 = vector.load %arg7[%c0_12, %c0_13] : memref<1x64xf32, #tpu.memory_space<vmem>>, vector<1x64xf32>
    %11 = vector.broadcast %10 : vector<1x64xf32> to vector<4x64xf32>
    %12 = arith.addf %9, %11 : vector<4x64xf32>
    %c0_14 = arith.constant 0 : index
    %c0_15 = arith.constant 0 : index
    %13 = vector.load %arg8[%c0_14, %c0_15] : memref<32x64xf32, #tpu.memory_space<vmem>>, vector<32x64xf32>
    %cst_16 = arith.constant dense<0.000000e+00> : vector<6x64xf32>
    %14 = tpu.matmul %2, %13, %cst_16 {dimension_numbers = #tpu.dot_dimension_numbers<[1], [0], [0], [1], [0, 0, 1, 1], [], []>} : vector<6x32xf32>, vector<32x64xf32>, vector<6x64xf32> -> vector<6x64xf32>
    %c0_17 = arith.constant 0 : index
    %c0_18 = arith.constant 0 : index
    %15 = vector.load %arg9[%c0_17, %c0_18] : memref<1x64xf32, #tpu.memory_space<vmem>>, vector<1x64xf32>
    %16 = vector.broadcast %15 : vector<1x64xf32> to vector<6x64xf32>
    %17 = arith.addf %14, %16 : vector<6x64xf32>
    %18 = vector.extract_strided_slice %12 {offsets = [0, 0], sizes = [4, 32], strides = [1, 1]} : vector<4x64xf32> to vector<4x32xf32>
    %19 = vector.extract_strided_slice %12 {offsets = [0, 32], sizes = [4, 32], strides = [1, 1]} : vector<4x64xf32> to vector<4x32xf32>
    %20 = vector.extract_strided_slice %17 {offsets = [0, 0], sizes = [6, 32], strides = [1, 1]} : vector<6x64xf32> to vector<6x32xf32>
    %21 = vector.extract_strided_slice %17 {offsets = [0, 32], sizes = [6, 32], strides = [1, 1]} : vector<6x64xf32> to vector<6x32xf32>
    %c0_19 = arith.constant 0 : index
    %c0_20 = arith.constant 0 : index
    %22 = vector.load %arg10[%c0_19, %c0_20] : memref<8x4xf32, #tpu.memory_space<vmem>>, vector<8x4xf32>
    %c0_21 = arith.constant 0 : index
    %c0_22 = arith.constant 0 : index
    %23 = vector.load %arg11[%c0_21, %c0_22] : memref<8x6xf32, #tpu.memory_space<vmem>>, vector<8x6xf32>
    %cst_23 = arith.constant 1.000000e+00 : f32
    %24 = vector.broadcast %cst_23 : f32 to vector<8x4xf32>
    %25 = arith.subf %22, %24 : vector<8x4xf32>
    %cst_24 = arith.constant 1.000000e+30 : f32
    %26 = vector.broadcast %cst_24 : f32 to vector<8x4xf32>
    %27 = arith.mulf %25, %26 : vector<8x4xf32>
    %cst_25 = arith.constant 1.000000e+00 : f32
    %28 = vector.broadcast %cst_25 : f32 to vector<8x6xf32>
    %29 = arith.subf %23, %28 : vector<8x6xf32>
    %cst_26 = arith.constant 1.000000e+30 : f32
    %30 = vector.broadcast %cst_26 : f32 to vector<8x6xf32>
    %31 = arith.mulf %29, %30 : vector<8x6xf32>
    %32 = vector.extract_strided_slice %7 {offsets = [0, 0], sizes = [8, 8], strides = [1, 1]} : vector<8x32xf32> to vector<8x8xf32>
    %33 = vector.extract_strided_slice %18 {offsets = [0, 0], sizes = [4, 8], strides = [1, 1]} : vector<4x32xf32> to vector<4x8xf32>
    %cst_27 = arith.constant dense<0.000000e+00> : vector<8x4xf32>
    %34 = tpu.matmul %32, %33, %cst_27 {dimension_numbers = #tpu.dot_dimension_numbers<[1], [1], [0], [0], [0, 0, 1, 0], [], []>} : vector<8x8xf32>, vector<4x8xf32>, vector<8x4xf32> -> vector<8x4xf32>
    %35 = arith.addf %34, %27 : vector<8x4xf32>
    %36 = vector.extract_strided_slice %20 {offsets = [0, 0], sizes = [6, 8], strides = [1, 1]} : vector<6x32xf32> to vector<6x8xf32>
    %cst_28 = arith.constant dense<0.000000e+00> : vector<8x6xf32>
    %37 = tpu.matmul %32, %36, %cst_28 {dimension_numbers = #tpu.dot_dimension_numbers<[1], [1], [0], [0], [0, 0, 1, 0], [], []>} : vector<8x8xf32>, vector<6x8xf32>, vector<8x6xf32> -> vector<8x6xf32>
    %38 = arith.addf %37, %31 : vector<8x6xf32>
    %cst_29 = arith.constant dense<0xFF800000> : vector<8xf32>
    %39 = vector.multi_reduction <maximumf>, %35, %cst_29 [1] : vector<8x4xf32> to vector<8xf32>
    %40 = vector.shape_cast %39 : vector<8xf32> to vector<8x1xf32>
    %cst_30 = arith.constant dense<0xFF800000> : vector<8xf32>
    %41 = vector.multi_reduction <maximumf>, %38, %cst_30 [1] : vector<8x6xf32> to vector<8xf32>
    %42 = vector.shape_cast %41 : vector<8xf32> to vector<8x1xf32>
    %43 = arith.maximumf %40, %42 : vector<8x1xf32>
    %44 = vector.broadcast %43 : vector<8x1xf32> to vector<8x4xf32>
    %45 = arith.subf %35, %44 : vector<8x4xf32>
    %46 = math.exp %45 : vector<8x4xf32>
    %47 = arith.mulf %46, %22 : vector<8x4xf32>
    %48 = vector.broadcast %43 : vector<8x1xf32> to vector<8x6xf32>
    %49 = arith.subf %38, %48 : vector<8x6xf32>
    %50 = math.exp %49 : vector<8x6xf32>
    %51 = arith.mulf %50, %23 : vector<8x6xf32>
    %cst_31 = arith.constant dense<0.000000e+00> : vector<8xf32>
    %52 = vector.multi_reduction <add>, %47, %cst_31 [1] : vector<8x4xf32> to vector<8xf32>
    %53 = vector.shape_cast %52 : vector<8xf32> to vector<8x1xf32>
    %cst_32 = arith.constant dense<0.000000e+00> : vector<8xf32>
    %54 = vector.multi_reduction <add>, %51, %cst_32 [1] : vector<8x6xf32> to vector<8xf32>
    %55 = vector.shape_cast %54 : vector<8xf32> to vector<8x1xf32>
    %56 = arith.addf %53, %55 : vector<8x1xf32>
    %cst_33 = arith.constant 1.000000e-16 : f32
    %57 = vector.broadcast %cst_33 : f32 to vector<8x1xf32>
    %58 = arith.addf %56, %57 : vector<8x1xf32>
    %59 = tpu.reciprocal %58 {approx = true} : vector<8x1xf32> -> vector<8x1xf32>
    %60 = vector.extract_strided_slice %19 {offsets = [0, 0], sizes = [4, 8], strides = [1, 1]} : vector<4x32xf32> to vector<4x8xf32>
    %cst_34 = arith.constant dense<0.000000e+00> : vector<8x8xf32>
    %61 = tpu.matmul %47, %60, %cst_34 {dimension_numbers = #tpu.dot_dimension_numbers<[1], [0], [0], [1], [0, 0, 1, 1], [], []>} : vector<8x4xf32>, vector<4x8xf32>, vector<8x8xf32> -> vector<8x8xf32>
    %62 = vector.extract_strided_slice %21 {offsets = [0, 0], sizes = [6, 8], strides = [1, 1]} : vector<6x32xf32> to vector<6x8xf32>
    %cst_35 = arith.constant dense<0.000000e+00> : vector<8x8xf32>
    %63 = tpu.matmul %51, %62, %cst_35 {dimension_numbers = #tpu.dot_dimension_numbers<[1], [0], [0], [1], [0, 0, 1, 1], [], []>} : vector<8x6xf32>, vector<6x8xf32>, vector<8x8xf32> -> vector<8x8xf32>
    %64 = arith.addf %61, %63 : vector<8x8xf32>
    %65 = vector.broadcast %59 : vector<8x1xf32> to vector<8x8xf32>
    %66 = arith.mulf %64, %65 : vector<8x8xf32>
    %67 = vector.extract_strided_slice %7 {offsets = [0, 8], sizes = [8, 8], strides = [1, 1]} : vector<8x32xf32> to vector<8x8xf32>
    %68 = vector.extract_strided_slice %18 {offsets = [0, 8], sizes = [4, 8], strides = [1, 1]} : vector<4x32xf32> to vector<4x8xf32>
    %cst_36 = arith.constant dense<0.000000e+00> : vector<8x4xf32>
    %69 = tpu.matmul %67, %68, %cst_36 {dimension_numbers = #tpu.dot_dimension_numbers<[1], [1], [0], [0], [0, 0, 1, 0], [], []>} : vector<8x8xf32>, vector<4x8xf32>, vector<8x4xf32> -> vector<8x4xf32>
    %70 = arith.addf %69, %27 : vector<8x4xf32>
    %71 = vector.extract_strided_slice %20 {offsets = [0, 8], sizes = [6, 8], strides = [1, 1]} : vector<6x32xf32> to vector<6x8xf32>
    %cst_37 = arith.constant dense<0.000000e+00> : vector<8x6xf32>
    %72 = tpu.matmul %67, %71, %cst_37 {dimension_numbers = #tpu.dot_dimension_numbers<[1], [1], [0], [0], [0, 0, 1, 0], [], []>} : vector<8x8xf32>, vector<6x8xf32>, vector<8x6xf32> -> vector<8x6xf32>
    %73 = arith.addf %72, %31 : vector<8x6xf32>
    %cst_38 = arith.constant dense<0xFF800000> : vector<8xf32>
    %74 = vector.multi_reduction <maximumf>, %70, %cst_38 [1] : vector<8x4xf32> to vector<8xf32>
    %75 = vector.shape_cast %74 : vector<8xf32> to vector<8x1xf32>
    %cst_39 = arith.constant dense<0xFF800000> : vector<8xf32>
    %76 = vector.multi_reduction <maximumf>, %73, %cst_39 [1] : vector<8x6xf32> to vector<8xf32>
    %77 = vector.shape_cast %76 : vector<8xf32> to vector<8x1xf32>
    %78 = arith.maximumf %75, %77 : vector<8x1xf32>
    %79 = vector.broadcast %78 : vector<8x1xf32> to vector<8x4xf32>
    %80 = arith.subf %70, %79 : vector<8x4xf32>
    %81 = math.exp %80 : vector<8x4xf32>
    %82 = arith.mulf %81, %22 : vector<8x4xf32>
    %83 = vector.broadcast %78 : vector<8x1xf32> to vector<8x6xf32>
    %84 = arith.subf %73, %83 : vector<8x6xf32>
    %85 = math.exp %84 : vector<8x6xf32>
    %86 = arith.mulf %85, %23 : vector<8x6xf32>
    %cst_40 = arith.constant dense<0.000000e+00> : vector<8xf32>
    %87 = vector.multi_reduction <add>, %82, %cst_40 [1] : vector<8x4xf32> to vector<8xf32>
    %88 = vector.shape_cast %87 : vector<8xf32> to vector<8x1xf32>
    %cst_41 = arith.constant dense<0.000000e+00> : vector<8xf32>
    %89 = vector.multi_reduction <add>, %86, %cst_41 [1] : vector<8x6xf32> to vector<8xf32>
    %90 = vector.shape_cast %89 : vector<8xf32> to vector<8x1xf32>
    %91 = arith.addf %88, %90 : vector<8x1xf32>
    %cst_42 = arith.constant 1.000000e-16 : f32
    %92 = vector.broadcast %cst_42 : f32 to vector<8x1xf32>
    %93 = arith.addf %91, %92 : vector<8x1xf32>
    %94 = tpu.reciprocal %93 {approx = true} : vector<8x1xf32> -> vector<8x1xf32>
    %95 = vector.extract_strided_slice %19 {offsets = [0, 8], sizes = [4, 8], strides = [1, 1]} : vector<4x32xf32> to vector<4x8xf32>
    %cst_43 = arith.constant dense<0.000000e+00> : vector<8x8xf32>
    %96 = tpu.matmul %82, %95, %cst_43 {dimension_numbers = #tpu.dot_dimension_numbers<[1], [0], [0], [1], [0, 0, 1, 1], [], []>} : vector<8x4xf32>, vector<4x8xf32>, vector<8x8xf32> -> vector<8x8xf32>
    %97 = vector.extract_strided_slice %21 {offsets = [0, 8], sizes = [6, 8], strides = [1, 1]} : vector<6x32xf32> to vector<6x8xf32>
    %cst_44 = arith.constant dense<0.000000e+00> : vector<8x8xf32>
    %98 = tpu.matmul %86, %97, %cst_44 {dimension_numbers = #tpu.dot_dimension_numbers<[1], [0], [0], [1], [0, 0, 1, 1], [], []>} : vector<8x6xf32>, vector<6x8xf32>, vector<8x8xf32> -> vector<8x8xf32>
    %99 = arith.addf %96, %98 : vector<8x8xf32>
    %100 = vector.broadcast %94 : vector<8x1xf32> to vector<8x8xf32>
    %101 = arith.mulf %99, %100 : vector<8x8xf32>
    %102 = vector.extract_strided_slice %7 {offsets = [0, 16], sizes = [8, 8], strides = [1, 1]} : vector<8x32xf32> to vector<8x8xf32>
    %103 = vector.extract_strided_slice %18 {offsets = [0, 16], sizes = [4, 8], strides = [1, 1]} : vector<4x32xf32> to vector<4x8xf32>
    %cst_45 = arith.constant dense<0.000000e+00> : vector<8x4xf32>
    %104 = tpu.matmul %102, %103, %cst_45 {dimension_numbers = #tpu.dot_dimension_numbers<[1], [1], [0], [0], [0, 0, 1, 0], [], []>} : vector<8x8xf32>, vector<4x8xf32>, vector<8x4xf32> -> vector<8x4xf32>
    %105 = arith.addf %104, %27 : vector<8x4xf32>
    %106 = vector.extract_strided_slice %20 {offsets = [0, 16], sizes = [6, 8], strides = [1, 1]} : vector<6x32xf32> to vector<6x8xf32>
    %cst_46 = arith.constant dense<0.000000e+00> : vector<8x6xf32>
    %107 = tpu.matmul %102, %106, %cst_46 {dimension_numbers = #tpu.dot_dimension_numbers<[1], [1], [0], [0], [0, 0, 1, 0], [], []>} : vector<8x8xf32>, vector<6x8xf32>, vector<8x6xf32> -> vector<8x6xf32>
    %108 = arith.addf %107, %31 : vector<8x6xf32>
    %cst_47 = arith.constant dense<0xFF800000> : vector<8xf32>
    %109 = vector.multi_reduction <maximumf>, %105, %cst_47 [1] : vector<8x4xf32> to vector<8xf32>
    %110 = vector.shape_cast %109 : vector<8xf32> to vector<8x1xf32>
    %cst_48 = arith.constant dense<0xFF800000> : vector<8xf32>
    %111 = vector.multi_reduction <maximumf>, %108, %cst_48 [1] : vector<8x6xf32> to vector<8xf32>
    %112 = vector.shape_cast %111 : vector<8xf32> to vector<8x1xf32>
    %113 = arith.maximumf %110, %112 : vector<8x1xf32>
    %114 = vector.broadcast %113 : vector<8x1xf32> to vector<8x4xf32>
    %115 = arith.subf %105, %114 : vector<8x4xf32>
    %116 = math.exp %115 : vector<8x4xf32>
    %117 = arith.mulf %116, %22 : vector<8x4xf32>
    %118 = vector.broadcast %113 : vector<8x1xf32> to vector<8x6xf32>
    %119 = arith.subf %108, %118 : vector<8x6xf32>
    %120 = math.exp %119 : vector<8x6xf32>
    %121 = arith.mulf %120, %23 : vector<8x6xf32>
    %cst_49 = arith.constant dense<0.000000e+00> : vector<8xf32>
    %122 = vector.multi_reduction <add>, %117, %cst_49 [1] : vector<8x4xf32> to vector<8xf32>
    %123 = vector.shape_cast %122 : vector<8xf32> to vector<8x1xf32>
    %cst_50 = arith.constant dense<0.000000e+00> : vector<8xf32>
    %124 = vector.multi_reduction <add>, %121, %cst_50 [1] : vector<8x6xf32> to vector<8xf32>
    %125 = vector.shape_cast %124 : vector<8xf32> to vector<8x1xf32>
    %126 = arith.addf %123, %125 : vector<8x1xf32>
    %cst_51 = arith.constant 1.000000e-16 : f32
    %127 = vector.broadcast %cst_51 : f32 to vector<8x1xf32>
    %128 = arith.addf %126, %127 : vector<8x1xf32>
    %129 = tpu.reciprocal %128 {approx = true} : vector<8x1xf32> -> vector<8x1xf32>
    %130 = vector.extract_strided_slice %19 {offsets = [0, 16], sizes = [4, 8], strides = [1, 1]} : vector<4x32xf32> to vector<4x8xf32>
    %cst_52 = arith.constant dense<0.000000e+00> : vector<8x8xf32>
    %131 = tpu.matmul %117, %130, %cst_52 {dimension_numbers = #tpu.dot_dimension_numbers<[1], [0], [0], [1], [0, 0, 1, 1], [], []>} : vector<8x4xf32>, vector<4x8xf32>, vector<8x8xf32> -> vector<8x8xf32>
    %132 = vector.extract_strided_slice %21 {offsets = [0, 16], sizes = [6, 8], strides = [1, 1]} : vector<6x32xf32> to vector<6x8xf32>
    %cst_53 = arith.constant dense<0.000000e+00> : vector<8x8xf32>
    %133 = tpu.matmul %121, %132, %cst_53 {dimension_numbers = #tpu.dot_dimension_numbers<[1], [0], [0], [1], [0, 0, 1, 1], [], []>} : vector<8x6xf32>, vector<6x8xf32>, vector<8x8xf32> -> vector<8x8xf32>
    %134 = arith.addf %131, %133 : vector<8x8xf32>
    %135 = vector.broadcast %129 : vector<8x1xf32> to vector<8x8xf32>
    %136 = arith.mulf %134, %135 : vector<8x8xf32>
    %137 = vector.extract_strided_slice %7 {offsets = [0, 24], sizes = [8, 8], strides = [1, 1]} : vector<8x32xf32> to vector<8x8xf32>
    %138 = vector.extract_strided_slice %18 {offsets = [0, 24], sizes = [4, 8], strides = [1, 1]} : vector<4x32xf32> to vector<4x8xf32>
    %cst_54 = arith.constant dense<0.000000e+00> : vector<8x4xf32>
    %139 = tpu.matmul %137, %138, %cst_54 {dimension_numbers = #tpu.dot_dimension_numbers<[1], [1], [0], [0], [0, 0, 1, 0], [], []>} : vector<8x8xf32>, vector<4x8xf32>, vector<8x4xf32> -> vector<8x4xf32>
    %140 = arith.addf %139, %27 : vector<8x4xf32>
    %141 = vector.extract_strided_slice %20 {offsets = [0, 24], sizes = [6, 8], strides = [1, 1]} : vector<6x32xf32> to vector<6x8xf32>
    %cst_55 = arith.constant dense<0.000000e+00> : vector<8x6xf32>
    %142 = tpu.matmul %137, %141, %cst_55 {dimension_numbers = #tpu.dot_dimension_numbers<[1], [1], [0], [0], [0, 0, 1, 0], [], []>} : vector<8x8xf32>, vector<6x8xf32>, vector<8x6xf32> -> vector<8x6xf32>
    %143 = arith.addf %142, %31 : vector<8x6xf32>
    %cst_56 = arith.constant dense<0xFF800000> : vector<8xf32>
    %144 = vector.multi_reduction <maximumf>, %140, %cst_56 [1] : vector<8x4xf32> to vector<8xf32>
    %145 = vector.shape_cast %144 : vector<8xf32> to vector<8x1xf32>
    %cst_57 = arith.constant dense<0xFF800000> : vector<8xf32>
    %146 = vector.multi_reduction <maximumf>, %143, %cst_57 [1] : vector<8x6xf32> to vector<8xf32>
    %147 = vector.shape_cast %146 : vector<8xf32> to vector<8x1xf32>
    %148 = arith.maximumf %145, %147 : vector<8x1xf32>
    %149 = vector.broadcast %148 : vector<8x1xf32> to vector<8x4xf32>
    %150 = arith.subf %140, %149 : vector<8x4xf32>
    %151 = math.exp %150 : vector<8x4xf32>
    %152 = arith.mulf %151, %22 : vector<8x4xf32>
    %153 = vector.broadcast %148 : vector<8x1xf32> to vector<8x6xf32>
    %154 = arith.subf %143, %153 : vector<8x6xf32>
    %155 = math.exp %154 : vector<8x6xf32>
    %156 = arith.mulf %155, %23 : vector<8x6xf32>
    %cst_58 = arith.constant dense<0.000000e+00> : vector<8xf32>
    %157 = vector.multi_reduction <add>, %152, %cst_58 [1] : vector<8x4xf32> to vector<8xf32>
    %158 = vector.shape_cast %157 : vector<8xf32> to vector<8x1xf32>
    %cst_59 = arith.constant dense<0.000000e+00> : vector<8xf32>
    %159 = vector.multi_reduction <add>, %156, %cst_59 [1] : vector<8x6xf32> to vector<8xf32>
    %160 = vector.shape_cast %159 : vector<8xf32> to vector<8x1xf32>
    %161 = arith.addf %158, %160 : vector<8x1xf32>
    %cst_60 = arith.constant 1.000000e-16 : f32
    %162 = vector.broadcast %cst_60 : f32 to vector<8x1xf32>
    %163 = arith.addf %161, %162 : vector<8x1xf32>
    %164 = tpu.reciprocal %163 {approx = true} : vector<8x1xf32> -> vector<8x1xf32>
    %165 = vector.extract_strided_slice %19 {offsets = [0, 24], sizes = [4, 8], strides = [1, 1]} : vector<4x32xf32> to vector<4x8xf32>
    %cst_61 = arith.constant dense<0.000000e+00> : vector<8x8xf32>
    %166 = tpu.matmul %152, %165, %cst_61 {dimension_numbers = #tpu.dot_dimension_numbers<[1], [0], [0], [1], [0, 0, 1, 1], [], []>} : vector<8x4xf32>, vector<4x8xf32>, vector<8x8xf32> -> vector<8x8xf32>
    %167 = vector.extract_strided_slice %21 {offsets = [0, 24], sizes = [6, 8], strides = [1, 1]} : vector<6x32xf32> to vector<6x8xf32>
    %cst_62 = arith.constant dense<0.000000e+00> : vector<8x8xf32>
    %168 = tpu.matmul %156, %167, %cst_62 {dimension_numbers = #tpu.dot_dimension_numbers<[1], [0], [0], [1], [0, 0, 1, 1], [], []>} : vector<8x6xf32>, vector<6x8xf32>, vector<8x8xf32> -> vector<8x8xf32>
    %169 = arith.addf %166, %168 : vector<8x8xf32>
    %170 = vector.broadcast %164 : vector<8x1xf32> to vector<8x8xf32>
    %171 = arith.mulf %169, %170 : vector<8x8xf32>
    %172 = tpu.concatenate %66, %101, %136, %171 in 1 : vector<8x8xf32>, vector<8x8xf32>, vector<8x8xf32>, vector<8x8xf32> -> vector<8x32xf32>
    %cst_63 = arith.constant 5.000000e-01 : f32
    %173 = vector.broadcast %cst_63 : f32 to vector<8x32xf32>
    %174 = arith.mulf %173, %172 : vector<8x32xf32>
    %cst_64 = arith.constant 0.707106769 : f32
    %175 = vector.broadcast %cst_64 : f32 to vector<8x32xf32>
    %176 = arith.mulf %172, %175 : vector<8x32xf32>
    %177 = math.absf %176 : vector<8x32xf32>
    %cst_65 = arith.constant 0.327591091 : f32
    %178 = vector.broadcast %cst_65 : f32 to vector<8x32xf32>
    %179 = arith.mulf %178, %177 : vector<8x32xf32>
    %cst_66 = arith.constant 1.000000e+00 : f32
    %180 = vector.broadcast %cst_66 : f32 to vector<8x32xf32>
    %181 = arith.addf %180, %179 : vector<8x32xf32>
    %cst_67 = arith.constant 1.000000e+00 : f32
    %182 = vector.broadcast %cst_67 : f32 to vector<8x32xf32>
    %183 = arith.divf %182, %181 : vector<8x32xf32>
    %cst_68 = arith.constant 1.06140542 : f32
    %184 = vector.broadcast %cst_68 : f32 to vector<8x32xf32>
    %185 = arith.mulf %184, %183 : vector<8x32xf32>
    %cst_69 = arith.constant -1.45315206 : f32
    %186 = vector.broadcast %cst_69 : f32 to vector<8x32xf32>
    %187 = arith.addf %185, %186 : vector<8x32xf32>
    %188 = arith.mulf %187, %183 : vector<8x32xf32>
    %cst_70 = arith.constant 1.42141378 : f32
    %189 = vector.broadcast %cst_70 : f32 to vector<8x32xf32>
    %190 = arith.addf %188, %189 : vector<8x32xf32>
    %191 = arith.mulf %190, %183 : vector<8x32xf32>
    %cst_71 = arith.constant -0.284496725 : f32
    %192 = vector.broadcast %cst_71 : f32 to vector<8x32xf32>
    %193 = arith.addf %191, %192 : vector<8x32xf32>
    %194 = arith.mulf %193, %183 : vector<8x32xf32>
    %cst_72 = arith.constant 0.254829586 : f32
    %195 = vector.broadcast %cst_72 : f32 to vector<8x32xf32>
    %196 = arith.addf %194, %195 : vector<8x32xf32>
    %197 = arith.mulf %196, %183 : vector<8x32xf32>
    %cst_73 = arith.constant 0.000000e+00 : f32
    %198 = vector.broadcast %cst_73 : f32 to vector<8x32xf32>
    %199 = arith.subf %198, %177 : vector<8x32xf32>
    %200 = arith.mulf %199, %177 : vector<8x32xf32>
    %201 = math.exp %200 : vector<8x32xf32>
    %202 = arith.mulf %197, %201 : vector<8x32xf32>
    %cst_74 = arith.constant 1.000000e+00 : f32
    %203 = vector.broadcast %cst_74 : f32 to vector<8x32xf32>
    %204 = arith.subf %203, %202 : vector<8x32xf32>
    %cst_75 = arith.constant 0.000000e+00 : f32
    %205 = vector.broadcast %cst_75 : f32 to vector<8x32xf32>
    %206 = arith.cmpf oge, %176, %205 : vector<8x32xf32>
    %cst_76 = arith.constant 0.000000e+00 : f32
    %207 = vector.broadcast %cst_76 : f32 to vector<8x32xf32>
    %208 = arith.subf %207, %204 : vector<8x32xf32>
    %209 = arith.select %206, %204, %208 : vector<8x32xi1>, vector<8x32xf32>
    %cst_77 = arith.constant 1.000000e+00 : f32
    %210 = vector.broadcast %cst_77 : f32 to vector<8x32xf32>
    %211 = arith.addf %210, %209 : vector<8x32xf32>
    %212 = arith.mulf %174, %211 : vector<8x32xf32>
    %c0_78 = arith.constant 0 : index
    %c0_79 = arith.constant 0 : index
    %213 = vector.load %arg12[%c0_78, %c0_79] : memref<32x32xf32, #tpu.memory_space<vmem>>, vector<32x32xf32>
    %cst_80 = arith.constant dense<0.000000e+00> : vector<8x32xf32>
    %214 = tpu.matmul %212, %213, %cst_80 {dimension_numbers = #tpu.dot_dimension_numbers<[1], [0], [0], [1], [0, 0, 1, 1], [], []>} : vector<8x32xf32>, vector<32x32xf32>, vector<8x32xf32> -> vector<8x32xf32>
    %c0_81 = arith.constant 0 : index
    %c0_82 = arith.constant 0 : index
    %215 = vector.load %arg13[%c0_81, %c0_82] : memref<1x32xf32, #tpu.memory_space<vmem>>, vector<1x32xf32>
    %216 = vector.broadcast %215 : vector<1x32xf32> to vector<8x32xf32>
    %217 = arith.addf %214, %216 : vector<8x32xf32>
    %c0_83 = arith.constant 0 : index
    %218 = memref.load %arg16[%c0_83] : memref<1xf32, #tpu.memory_space<smem>>
    %219 = vector.broadcast %218 : f32 to vector<8x32xf32>
    %220 = arith.mulf %219, %217 : vector<8x32xf32>
    %cst_84 = arith.constant 1.000000e+00 : f32
    %221 = arith.subf %cst_84, %218 : f32
    %c0_85 = arith.constant 0 : index
    %c0_86 = arith.constant 0 : index
    %222 = vector.load %arg3[%c0_85, %c0_86] : memref<8x32xf32, #tpu.memory_space<vmem>>, vector<8x32xf32>
    %223 = vector.broadcast %221 : f32 to vector<8x32xf32>
    %224 = arith.mulf %223, %222 : vector<8x32xf32>
    %225 = arith.addf %220, %224 : vector<8x32xf32>
    %c0_87 = arith.constant 0 : index
    %c0_88 = arith.constant 0 : index
    %226 = vector.load %arg14[%c0_87, %c0_88] : memref<32x128xf32, #tpu.memory_space<vmem>>, vector<32x128xf32>
    %cst_89 = arith.constant dense<0.000000e+00> : vector<8x128xf32>
    %227 = tpu.matmul %225, %226, %cst_89 {dimension_numbers = #tpu.dot_dimension_numbers<[1], [0], [0], [1], [0, 0, 1, 1], [], []>} : vector<8x32xf32>, vector<32x128xf32>, vector<8x128xf32> -> vector<8x128xf32>
    %c0_90 = arith.constant 0 : index
    %c0_91 = arith.constant 0 : index
    %228 = vector.load %arg15[%c0_90, %c0_91] : memref<1x128xf32, #tpu.memory_space<vmem>>, vector<1x128xf32>
    %229 = vector.broadcast %228 : vector<1x128xf32> to vector<8x128xf32>
    %230 = arith.addf %227, %229 : vector<8x128xf32>
    %c0_92 = arith.constant 0 : index
    %c0_93 = arith.constant 0 : index
    %231 = vector.load %arg17[%c0_92, %c0_93] : memref<8x128xf32, #tpu.memory_space<vmem>>, vector<8x128xf32>
    tpu.vector_store %arg17[%c0_92, %c0_93], %230 {strides = array<i32>} : memref<8x128xf32, #tpu.memory_space<vmem>>, vector<8x128xf32>,
    return
  }
}

</mosaic_0001>

<bundles_post_ra>
// kernel: tpu_custom_call.1
= control target key start
LH: loop header
LB: loop body
LE: loop exit
PB: predicated region body
PF: predicated region fallthrough
CT: control target
= control target key end

     0   :  { %s3190_s0 = inlined_call_operand.hbm [shape: f32[8,32], index: 0, kind: input, shape index: {}]   ;;  %s3191_s1 = inlined_call_operand.hbm [shape: f32[4,32], index: 1, kind: input, shape index: {}]   ;;  %s3192_s2 = inlined_call_operand.hbm [shape: f32[6,32], index: 2, kind: input, shape index: {}]   ;;  %s3193_s3 = inlined_call_operand.hbm [shape: f32[8,32], index: 3, kind: input, shape index: {}]   ;;  %s3194_s4 = inlined_call_operand.hbm [shape: f32[32,32], index: 4, kind: input, shape index: {}]   ;;  %s3195_s5 = inlined_call_operand.hbm [shape: f32[1,32], index: 5, kind: input, shape index: {}]   ;;  %s3196_s6 = inlined_call_operand.vmem [shape: f32[32,64], index: 6, kind: input, shape index: {}]   ;;  %s3197_s7 = inlined_call_operand.hbm [shape: f32[1,64], index: 7, kind: input, shape index: {}]   ;;  %s3198_s8 = inlined_call_operand.hbm [shape: f32[32,64], index: 8, kind: input, shape index: {}]   ;;  %s3199_s9 = inlined_call_operand.hbm [shape: f32[1,64], index: 9, kind: input, shape index: {}]   ;;  %s3200_s10 = inlined_call_operand.vmem [shape: f32[8,4], index: 10, kind: input, shape index: {}]   ;;  %s3201_s11 = inlined_call_operand.hbm [shape: f32[8,6], index: 11, kind: input, shape index: {}]   ;;  %s3202_s12 = inlined_call_operand.hbm [shape: f32[32,32], index: 12, kind: input, shape index: {}]   ;;  %s3203_s13 = inlined_call_operand.hbm [shape: f32[1,32], index: 13, kind: input, shape index: {}]   ;;  %s3204_s14 = inlined_call_operand.vmem [shape: f32[32,128], index: 14, kind: input, shape index: {}]   ;;  %s3205_s15 = inlined_call_operand.vmem [shape: f32[1,128], index: 15, kind: input, shape index: {}]   ;;  %s3206_s16 = inlined_call_operand.<no memory space> [shape: f32[1], index: 16, kind: input, shape index: {}]   ;;  %s3207_s17 = inlined_call_operand.hbm [shape: f32[8,128], index: 17, kind: output, shape index: {}]  }
   0x1   :  { %3210 = sst [smem:[#allocation32_spill]] %s3190_s0 }
   0x2   :  { %3211 = sst [smem:[#allocation33_spill]] %s3191_s1 }
   0x3   :  { %23 = vsyncpa [#allocation4], 0 }
   0x4   :  { %24 = vsyncpa [#allocation7], 0 }
   0x5   :  { %25 = vsyncpa [#allocation10], 0 }
   0x6   :  { %26 = vsyncpa [#allocation13], 0 }
   0x7   :  { %27 = vsyncpa [#allocation16], 0 }
   0x8   :  { %28 = vsyncpa [#allocation19], 0 }
   0x9   :  { %29 = vsyncpa [#allocation22], 0 }
   0xa   :  { %30 = vsyncpa [#allocation5], 0  ;;  %s2663_s24 = smov [#allocation6]   ;;  %s2664_s26 = smov [#allocation9]  }
   0xb   :  { %s47_s25 = sshll.u32 %s2663_s24, 4  ;;  %s67_s27 = sshll.u32 %s2664_s26, 4  ;;  %s48_s25 = int_to_ptr.vmem [resolvable:$true] %s47_s25  ;;  %s68_s27 = int_to_ptr.vmem [resolvable:$true] %s67_s27 }
   0xc   :  { %s3212_s0 = sld [smem:[#allocation33_spill]] }
  0x12   :  { %s2361_s30 = scalar_lea.hbm %s3212_s0, 64 }
  0x13   :  { %p2362_p0 = scmp.ne.s32.totalorder %s3212_s0, %s2361_s30  ;;  %p2365_p1 = scmp.lt.u32.totalorder %s2361_s30, %s3212_s0 }
  0x15   :  { %p2367_p2 = pnand %p2365_p1, %p2362_p0 }
  0x17   :  { %2370 = shalt.err (!%p2367_p2)
}
  0x18   :  { %s2371_s21 = scalar_lea.vmem %s48_s25, 64  ;;  %p2376_p4 = scmp.lt.s32.totalorder %s48_s25, %s48_s25 }
  0x19   :  { %p2372_p3 = scmp.ne.s32.totalorder %s48_s25, %s2371_s21  ;;  %p2377_p5 = scmp.lt.s32.totalorder %s2371_s21, %s2371_s21 }
  0x1b   :  { %p2378_p6 = por %p2377_p5, %p2376_p4 }
  0x1d   :  { %p2379_p7 = pnand %p2378_p6, %p2372_p3 }
  0x1f   :  { %2382 = shalt.err (!%p2379_p7)
}
  0x20   :  { %50 = dma.hbm_to_vmem [thread:$0]  %s3212_s0, 64, %s48_s25, [#allocation7]  }
  0x21   :  { %s2383_s28 = scalar_lea.hbm %s3193_s3, 128 }
  0x22   :  { %p2384_p8 = scmp.ne.s32.totalorder %s3193_s3, %s2383_s28  ;;  %p2387_p9 = scmp.lt.u32.totalorder %s2383_s28, %s3193_s3 }
  0x24   :  { %p2389_p10 = pnand %p2387_p9, %p2384_p8 }
  0x26   :  { %2392 = shalt.err (!%p2389_p10)
}
  0x27   :  { %s2393_s1 = scalar_lea.vmem %s68_s27, 128  ;;  %p2398_p12 = scmp.lt.s32.totalorder %s68_s27, %s68_s27 }
  0x28   :  { %p2394_p11 = scmp.ne.s32.totalorder %s68_s27, %s2393_s1  ;;  %p2399_p13 = scmp.lt.s32.totalorder %s2393_s1, %s2393_s1 }
  0x2a   :  { %p2400_p0 = por %p2399_p13, %p2398_p12 }
  0x2c   :  { %p2401_p1 = pnand %p2400_p0, %p2394_p11 }
  0x2e   :  { %2404 = shalt.err (!%p2401_p1)
}
  0x2f   :  { %70 = dma.hbm_to_vmem [thread:$0]  %s3193_s3, 128, %s68_s27, [#allocation10]  }
  0x30   :  { %s2665_s20 = smov [#allocation12]   ;;  %s2405_s24 = scalar_lea.hbm %s3195_s5, 16 }
  0x31   :  { %s89_s21 = sshll.u32 %s2665_s20, 4  ;;  %p2406_p2 = scmp.ne.s32.totalorder %s3195_s5, %s2405_s24  ;;  %s90_s21 = int_to_ptr.vmem [resolvable:$true] %s89_s21 }
  0x32   :  { %p2409_p3 = scmp.lt.u32.totalorder %s2405_s24, %s3195_s5 }
  0x34   :  { %p2411_p4 = pnand %p2409_p3, %p2406_p2 }
  0x36   :  { %2414 = shalt.err (!%p2411_p4)
}
  0x37   :  { %s2415_s30 = scalar_lea.vmem %s90_s21, 16  ;;  %s2419_s3 = scalar_lea.vmem %s90_s21, 32 }
  0x38   :  { %p2416_p5 = scmp.ne.s32.totalorder %s90_s21, %s2415_s30  ;;  %p2420_p6 = scmp.lt.s32.totalorder %s90_s21, %s90_s21 }
  0x39   :  { %p2421_p7 = scmp.lt.s32.totalorder %s2419_s3, %s2415_s30 }
  0x3b   :  { %p2422_p8 = por %p2421_p7, %p2420_p6 }
  0x3d   :  { %p2423_p9 = pnand %p2422_p8, %p2416_p5 }
  0x3f   :  { %2426 = shalt.err (!%p2423_p9)
}
  0x40   :  { %92 = dma.hbm_to_vmem [thread:$0]  %s3195_s5, 16, %s90_s21, [#allocation13]  }
  0x41   :  { %s2666_s1 = smov [#allocation15]   ;;  %s2667_s0 = smov [#allocation18]  }
  0x42   :  { %s110_s25 = sshll.u32 %s2666_s1, 4  ;;  %s135_s20 = sshll.u32 %s2667_s0, 4  ;;  %s111_s25 = int_to_ptr.vmem [resolvable:$true] %s110_s25  ;;  %s136_s20 = int_to_ptr.vmem [resolvable:$true] %s135_s20 }
  0x43   :  { %s2427_s24 = scalar_lea.hbm %s3198_s8, 512 }
  0x44   :  { %p2428_p10 = scmp.ne.s32.totalorder %s3198_s8, %s2427_s24  ;;  %p2431_p11 = scmp.lt.u32.totalorder %s2427_s24, %s3198_s8 }
  0x46   :  { %p2433_p12 = pnand %p2431_p11, %p2428_p10 }
  0x48   :  { %2436 = shalt.err (!%p2433_p12)
}
  0x49   :  { %s2437_s5 = scalar_lea.vmem %s111_s25, 512  ;;  %p2442_p0 = scmp.lt.s32.totalorder %s111_s25, %s111_s25 }
  0x4a   :  { %p2438_p13 = scmp.ne.s32.totalorder %s111_s25, %s2437_s5  ;;  %p2443_p1 = scmp.lt.s32.totalorder %s2437_s5, %s2437_s5 }
  0x4c   :  { %p2444_p2 = por %p2443_p1, %p2442_p0 }
  0x4e   :  { %p2445_p3 = pnand %p2444_p2, %p2438_p13 }
  0x50   :  { %2448 = shalt.err (!%p2445_p3)
}
  0x51   :  { %s2668_s21 = smov 128   ;;  %s2669_s30 = smov 8  }
  0x52   :  { %116 = dma.hbm_to_vmem [thread:$0]  %s3198_s8, 512, %s111_s25, [#allocation16], %s2668_s21, %s2668_s21, %s2669_s30  }
  0x53   :  { %s2449_s0 = scalar_lea.hbm %s3201_s11, 128 }
  0x54   :  { %p2450_p4 = scmp.ne.s32.totalorder %s3201_s11, %s2449_s0  ;;  %p2453_p5 = scmp.lt.u32.totalorder %s2449_s0, %s3201_s11 }
  0x56   :  { %p2455_p6 = pnand %p2453_p5, %p2450_p4 }
  0x58   :  { %2458 = shalt.err (!%p2455_p6)
}
  0x59   :  { %s2459_s28 = scalar_lea.vmem %s136_s20, 128  ;;  %p2464_p8 = scmp.lt.s32.totalorder %s136_s20, %s136_s20 }
  0x5a   :  { %p2460_p7 = scmp.ne.s32.totalorder %s136_s20, %s2459_s28  ;;  %p2465_p9 = scmp.lt.s32.totalorder %s2459_s28, %s2459_s28 }
  0x5c   :  { %p2466_p10 = por %p2465_p9, %p2464_p8 }
  0x5e   :  { %p2467_p11 = pnand %p2466_p10, %p2460_p7 }
  0x60   :  { %2470 = shalt.err (!%p2467_p11)
}
  0x61   :  { %138 = dma.hbm_to_vmem [thread:$0]  %s3201_s11, 128, %s136_s20, [#allocation19]  }
  0x62   :  { %s2670_s29 = smov [#allocation3]   ;;  %s2671_s5 = smov [#allocation8]  }
  0x63   :  { %s37_s18 = sshll.u32 %s2670_s29, 4  ;;  %s57_s3 = sshll.u32 %s2671_s5, 4  ;;  %s38_s18 = int_to_ptr.vmem [resolvable:$true] %s37_s18  ;;  %s58_s3 = int_to_ptr.vmem [resolvable:$true] %s57_s3 }
  0x64   :  { %s3213_s1 = sld [smem:[#allocation32_spill]] }
  0x6a   :  { %s2471_s0 = scalar_lea.hbm %s3213_s1, 128 }
  0x6b   :  { %p2472_p12 = scmp.ne.s32.totalorder %s3213_s1, %s2471_s0  ;;  %p2475_p13 = scmp.lt.u32.totalorder %s2471_s0, %s3213_s1 }
  0x6d   :  { %p2477_p0 = pnand %p2475_p13, %p2472_p12 }
  0x6f   :  { %2480 = shalt.err (!%p2477_p0)
}
  0x70   :  { %s2481_s11 = scalar_lea.vmem %s38_s18, 128  ;;  %p2486_p2 = scmp.lt.s32.totalorder %s38_s18, %s38_s18 }
  0x71   :  { %p2482_p1 = scmp.ne.s32.totalorder %s38_s18, %s2481_s11  ;;  %p2487_p3 = scmp.lt.s32.totalorder %s2481_s11, %s2481_s11 }
  0x73   :  { %p2488_p4 = por %p2487_p3, %p2486_p2 }
  0x75   :  { %p2489_p5 = pnand %p2488_p4, %p2482_p1 }
  0x77   :  { %2492 = shalt.err (!%p2489_p5)
}
  0x78   :  { %40 = dma.hbm_to_vmem [thread:$0]  %s3213_s1, 128, %s38_s18, [#allocation4]  }
  0x79   :  { %s2493_s29 = scalar_lea.hbm %s3192_s2, 128 }
  0x7a   :  { %p2494_p6 = scmp.ne.s32.totalorder %s3192_s2, %s2493_s29  ;;  %p2497_p7 = scmp.lt.u32.totalorder %s2493_s29, %s3192_s2 }
  0x7c   :  { %p2499_p8 = pnand %p2497_p7, %p2494_p6 }
  0x7e   :  { %2502 = shalt.err (!%p2499_p8)
}
  0x7f   :  { %s2503_s22 = scalar_lea.vmem %s58_s3, 128  ;;  %p2508_p10 = scmp.lt.s32.totalorder %s58_s3, %s58_s3 }
  0x80   :  { %p2504_p9 = scmp.ne.s32.totalorder %s58_s3, %s2503_s22  ;;  %p2509_p11 = scmp.lt.s32.totalorder %s2503_s22, %s2503_s22 }
  0x82   :  { %p2510_p12 = por %p2509_p11, %p2508_p10 }
  0x84   :  { %p2511_p13 = pnand %p2510_p12, %p2504_p9 }
  0x86   :  { %2514 = shalt.err (!%p2511_p13)
}
  0x87   :  { %60 = dma.hbm_to_vmem [thread:$0]  %s3192_s2, 128, %s58_s3, [#allocation7]  }
  0x88   :  { %s2672_s23 = smov [#allocation11]   ;;  %s2673_s26 = smov [#allocation14]  }
  0x89   :  { %s76_s24 = sshll.u32 %s2672_s23, 4  ;;  %s101_s11 = sshll.u32 %s2673_s26, 4  ;;  %s77_s24 = int_to_ptr.vmem [resolvable:$true] %s76_s24  ;;  %s102_s11 = int_to_ptr.vmem [resolvable:$true] %s101_s11 }
  0x8a   :  { %s2515_s8 = scalar_lea.hbm %s3194_s4, 512 }
  0x8b   :  { %p2516_p0 = scmp.ne.s32.totalorder %s3194_s4, %s2515_s8  ;;  %p2519_p1 = scmp.lt.u32.totalorder %s2515_s8, %s3194_s4 }
  0x8d   :  { %p2521_p2 = pnand %p2519_p1, %p2516_p0 }
  0x8f   :  { %2524 = shalt.err (!%p2521_p2)
}
  0x90   :  { %s2525_s2 = scalar_lea.vmem %s77_s24, 512  ;;  %p2530_p4 = scmp.lt.s32.totalorder %s77_s24, %s77_s24 }
  0x91   :  { %p2526_p3 = scmp.ne.s32.totalorder %s77_s24, %s2525_s2  ;;  %p2531_p5 = scmp.lt.s32.totalorder %s2525_s2, %s2525_s2 }
  0x93   :  { %p2532_p6 = por %p2531_p5, %p2530_p4 }
  0x95   :  { %p2533_p7 = pnand %p2532_p6, %p2526_p3 }
  0x97   :  { %2536 = shalt.err (!%p2533_p7)
}
  0x98   :  { %82 = dma.hbm_to_vmem [thread:$0]  %s3194_s4, 512, %s77_s24, [#allocation10], %s2668_s21, %s2668_s21, %s2669_s30  }
  0x99   :  { %s2537_s18 = scalar_lea.hbm %s3197_s7, 16 }
  0x9a   :  { %p2538_p8 = scmp.ne.s32.totalorder %s3197_s7, %s2537_s18  ;;  %p2541_p9 = scmp.lt.u32.totalorder %s2537_s18, %s3197_s7 }
  0x9c   :  { %p2543_p10 = pnand %p2541_p9, %p2538_p8 }
  0x9e   :  { %2546 = shalt.err (!%p2543_p10)
}
  0x9f   :  { %s2547_s28 = scalar_lea.vmem %s102_s11, 16  ;;  %s2551_s8 = scalar_lea.vmem %s102_s11, 32 }
  0xa0   :  { %p2548_p11 = scmp.ne.s32.totalorder %s102_s11, %s2547_s28  ;;  %p2552_p12 = scmp.lt.s32.totalorder %s102_s11, %s102_s11 }
  0xa1   :  { %p2553_p13 = scmp.lt.s32.totalorder %s2551_s8, %s2547_s28 }
  0xa3   :  { %p2554_p0 = por %p2553_p13, %p2552_p12 }
  0xa5   :  { %p2555_p1 = pnand %p2554_p0, %p2548_p11 }
  0xa7   :  { %2558 = shalt.err (!%p2555_p1)
}
  0xa8   :  { %104 = dma.hbm_to_vmem [thread:$0]  %s3197_s7, 16, %s102_s11, [#allocation13]  }
  0xa9   :  { %s2674_s25 = smov [#allocation17]   ;;  %s2675_s5 = smov [#allocation20]  }
  0xaa   :  { %s123_s29 = sshll.u32 %s2674_s25, 4  ;;  %s144_s27 = sshll.u32 %s2675_s5, 4  ;;  %s124_s29 = int_to_ptr.vmem [resolvable:$true] %s123_s29  ;;  %s145_s27 = int_to_ptr.vmem [resolvable:$true] %s144_s27 }
  0xab   :  { %s2559_s19 = scalar_lea.hbm %s3199_s9, 16 }
  0xac   :  { %p2560_p2 = scmp.ne.s32.totalorder %s3199_s9, %s2559_s19  ;;  %p2563_p3 = scmp.lt.u32.totalorder %s2559_s19, %s3199_s9 }
  0xae   :  { %p2565_p4 = pnand %p2563_p3, %p2560_p2 }
  0xb0   :  { %2568 = shalt.err (!%p2565_p4)
}
  0xb1   :  { %s2569_s7 = scalar_lea.vmem %s124_s29, 16  ;;  %s2573_s11 = scalar_lea.vmem %s124_s29, 32 }
  0xb2   :  { %p2570_p5 = scmp.ne.s32.totalorder %s124_s29, %s2569_s7  ;;  %p2574_p6 = scmp.lt.s32.totalorder %s124_s29, %s124_s29 }
  0xb3   :  { %p2575_p7 = scmp.lt.s32.totalorder %s2573_s11, %s2569_s7 }
  0xb5   :  { %p2576_p8 = por %p2575_p7, %p2574_p6 }
  0xb7   :  { %p2577_p9 = pnand %p2576_p8, %p2570_p5 }
  0xb9   :  { %2580 = shalt.err (!%p2577_p9)
}
  0xba   :  { %126 = dma.hbm_to_vmem [thread:$0]  %s3199_s9, 16, %s124_s29, [#allocation16]  }
  0xbb   :  { %s2581_s8 = scalar_lea.hbm %s3202_s12, 512 }
  0xbc   :  { %p2582_p10 = scmp.ne.s32.totalorder %s3202_s12, %s2581_s8  ;;  %p2585_p11 = scmp.lt.u32.totalorder %s2581_s8, %s3202_s12 }
  0xbe   :  { %p2587_p12 = pnand %p2585_p11, %p2582_p10 }
  0xc0   :  { %2590 = shalt.err (!%p2587_p12)
}
  0xc1   :  { %s2591_s2 = scalar_lea.vmem %s145_s27, 512  ;;  %p2596_p0 = scmp.lt.s32.totalorder %s145_s27, %s145_s27 }
  0xc2   :  { %p2592_p13 = scmp.ne.s32.totalorder %s145_s27, %s2591_s2  ;;  %p2597_p1 = scmp.lt.s32.totalorder %s2591_s2, %s2591_s2 }
  0xc4   :  { %p2598_p2 = por %p2597_p1, %p2596_p0 }
  0xc6   :  { %p2599_p3 = pnand %p2598_p2, %p2592_p13 }
  0xc8   :  { %2602 = shalt.err (!%p2599_p3)
}
  0xc9   :  { %150 = dma.hbm_to_vmem [thread:$0]  %s3202_s12, 512, %s145_s27, [#allocation19], %s2668_s21, %s2668_s21, %s2669_s30  }
  0xca   :  { %s2676_s3 = smov [#allocation21]   ;;  %s2603_s18 = scalar_lea.hbm %s3203_s13, 16 }
  0xcb   :  { %s157_s19 = sshll.u32 %s2676_s3, 4  ;;  %p2604_p4 = scmp.ne.s32.totalorder %s3203_s13, %s2603_s18  ;;  %s158_s19 = int_to_ptr.vmem [resolvable:$true] %s157_s19 }
  0xcc   :  { %p2607_p5 = scmp.lt.u32.totalorder %s2603_s18, %s3203_s13 }
  0xce   :  { %p2609_p6 = pnand %p2607_p5, %p2604_p4 }
  0xd0   :  { %2612 = shalt.err (!%p2609_p6)
}
  0xd1   :  { %s2613_s26 = scalar_lea.vmem %s158_s19, 16  ;;  %s2617_s12 = scalar_lea.vmem %s158_s19, 32 }
  0xd2   :  { %p2614_p7 = scmp.ne.s32.totalorder %s158_s19, %s2613_s26  ;;  %p2618_p8 = scmp.lt.s32.totalorder %s158_s19, %s158_s19 }
  0xd3   :  { %p2619_p9 = scmp.lt.s32.totalorder %s2617_s12, %s2613_s26 }
  0xd5   :  { %p2620_p10 = por %p2619_p9, %p2618_p8 }
  0xd7   :  { %p2621_p11 = pnand %p2620_p10, %p2614_p7 }
  0xd9   :  { %2624 = shalt.err (!%p2621_p11)
}
  0xda   :  { %160 = dma.hbm_to_vmem [thread:$0]  %s3203_s13, 16, %s158_s19, [#allocation22]  }
  0xdb   :  { %2647 = dma.done.wait [#allocation4], 128  }
  0xdc   :  { %2648 = vsyncadd [#allocation4], 4294967168 }
  0xdd   :  { %2649 = dma.done.wait [#allocation7], 192  }
  0xde   :  { %2650 = vsyncadd [#allocation7], 4294967104 }
  0xdf   :  { %2651 = dma.done.wait [#allocation10], 640  }
  0xe0   :  { %2652 = vsyncadd [#allocation10], 4294966656 }
  0xe1   :  { %2653 = dma.done.wait [#allocation13], 32  }
  0xe2   :  { %2654 = vsyncadd [#allocation13], 4294967264 }
  0xe3   :  { %2655 = dma.done.wait [#allocation16], 528  }
  0xe4   :  { %2656 = vsyncadd [#allocation16], 4294966768 }
  0xe5   :  { %2657 = dma.done.wait [#allocation19], 640  }
  0xe6   :  { %2658 = vsyncadd [#allocation19], 4294966656 }
  0xe7   :  { %2659 = dma.done.wait [#allocation22], 16  }
  0xe8   :  { %2660 = vsyncadd [#allocation22], 4294967280  ;;  %v2677_v0 = vmov 0.0|0.0   ;;  %vm2678_vm0 = vmmov 0   ;;  %v2679_v1 = vmov 0.0   ;;  %v206_v2 = vld [vmem:[#allocation11] sm:$0xff] }
  0xe9   :  { %2269 = vmatprep.subr.bf16.mxu0 %v2677_v0  ;;  %2275 = vmatprep.subr.bf16.mxu1 %v2677_v0  ;;  %v207_v3 = vld [vmem:[#allocation11 + $0x8] sm:$0xff]  ;;  %v208_v7 = vld [vmem:[#allocation11 + $0x10] sm:$0xff]  ;;  %v209_v8 = vld [vmem:[#allocation11 + $0x18] sm:$0xff]  ;;  %vm217_vm1 = vcmask 261120   ;;  %vm465_vm2 = vcmask 64512   ;;  %s2681_s2 = smov 120  }
  0xea   :  { %2142 = vmatprep.mubr.msk.f32.mxu0 %vm2678_vm0, %v2679_v1  ;;  %2153 = vmatprep.mubr.msk.f32.mxu1 %vm2678_vm0, %v2679_v1  ;;  %v291_v4 = vld [vmem:[%s3196_s6] sm:$0xff]  ;;  %v2270_v5 = vpack.c.bf16 %v207_v3, %v206_v2  ;;  %v292_v6 = vld [vmem:[%s3196_s6 + $0x8] sm:$0xff]  ;;  %v293_v10 = vld [vmem:[%s3196_s6 + $0x10] sm:$0xff]  ;;  %v2273_v12 = vpack.c.bf16 %v209_v8, %v208_v7  ;;  %s2682_s9 = smov 112   ;;  %s2683_s29 = smov 104   ;;  %vm646_vm3 = vcmask 1045504  }
  0xeb   :  { %v2276_v9 = vpack.c.bf16 %v292_v6, %v291_v4  ;;  %v294_v11 = vld [vmem:[%s3196_s6 + $0x18] sm:$0xff]  ;;  %v375_v14 = vld [vmem:[#allocation15] sm:$0xff]  ;;  %v376_v15 = vld [vmem:[#allocation15 + $0x8] sm:$0xff]  ;;  %s2680_s6 = smov 96   ;;  %vm615_vm4 = vcmask 31744   ;;  %vm619_vm5 = vcmask 48128  }
  0xec   :  { %2271 = vmatpush3.bf16.msra.mxu0 %v2270_v5  ;;  %v2279_v13 = vpack.c.bf16 %v294_v11, %v293_v10  ;;  %v203_v16 = vld [vmem:[#allocation3] sm:$0xff]  ;;  %v2282_v17 = vpack.c.bf16 %v376_v15, %v375_v14  ;;  %v204_v18 = vld [vmem:[#allocation6] sm:$0xf]  ;;  %v377_v19 = vld [vmem:[#allocation15 + $0x10] sm:$0xff]  ;;  %s2685_s0 = smov 80   ;;  %s2686_s22 = smov 72  }
  0xed   :  { %2277 = vmatpush3.bf16.msra.mxu1 %v2276_v9  ;;  %2272 = vmatprep.subr.bf16.mxu0 %v2677_v0  ;;  %v378_v20 = vld [vmem:[#allocation15 + $0x18] sm:$0xff]  ;;  %v205_v22 = vld [vmem:[#allocation8] sm:$0x3f]  ;;  %v2037_v31 = vld [vmem:[#allocation17] ss:$0 sm:$0xff]  ;;  %vm724_vm6 = vcmask 1043456  }
  0xee   :  { %2278 = vmatprep.subr.bf16.mxu1 %v2677_v0  ;;  %v2285_v21 = vpack.c.bf16 %v378_v20, %v377_v19  ;;  %v2035_v23 = vld [vmem:[#allocation14] ss:$0 sm:$0xff]  ;;  %v2033_v27 = vld [vmem:[#allocation12] ss:$0 sm:$0xff]  ;;  %v2996_v36 = vld [vmem:[%s3200_s10] sm:$0xff]  ;;  %s2684_s10 = smov 88  }
  0xef   :  { %v2039_v37 = vadd.f32 -1.0, %v2996_v36  ;;  %v3001_v39 = vld [vmem:[#allocation18] sm:$0xff]  ;;  %s2687_s18 = smov 16   ;;  %vm1804_vm7 = vcmask 130048   ;;  %vm1806_vm8 = vcmask 195584   ;;  %s1922_s28 = ssub.f32 1.0, %s3206_s16 }
  0xf0   :  { %2274 = vmatpush3.bf16.msra.mxu0 %v2273_v12  ;;  %v2040_v41 = vadd.f32 -1.0, %v3001_v39  ;;  %s2689_s25 = smov [#allocation23]  }
  0xf1   :  { %2280 = vmatpush3.bf16.msra.mxu1 %v2279_v13  ;;  %2281 = vmatprep.subr.bf16.mxu0 %v2677_v0  ;;  %v2999_v38 = vmul.f32 1e+30, %v2039_v37  ;;  %s2018_s5 = sshll.u32 %s2689_s25, 4  ;;  %s2019_s5 = int_to_ptr.vmem [resolvable:$true] %s2018_s5 }
  0xf2   :  { %2167 = vmatprep.subr.mxu1 %v2679_v1  ;;  %v3009_v45 = vmul.f32 1e+30, %v2040_v41  ;;  %p2630_p13 = scmp.lt.s32.totalorder %s2019_s5, %s2019_s5 }
  0xf3   :  { %2143 = vmatmul.mubr.msk.f32.vlgmr.msra.gmra.mrb[0].mxu0 %vm217_vm1, %v203_v16 }
  0xf4   :  { %2154 = vmatmul.mubr.msk.f32.vlgmr.msra.gmra.mrb[0].mxu1 %vm217_vm1, %v204_v18  ;;  %2283 = vmatpush3.bf16.msra.mxu0 %v2282_v17 }
  0xf5   :  { %2284 = vmatprep.subr.bf16.mxu0 %v2677_v0  ;;  %2164 = vmatprep.mubr.msk.f32.mxu0 %vm2678_vm0, %v2679_v1 }
  0xf6   :  { %2169 = vmatprep.mubr.msk.f32.mxu1 %vm2678_vm0, %v2679_v1 }
  0xf8   :  { %2286 = vmatpush3.bf16.msra.mxu0 %v2285_v21 }
  0xf9   :  { %2182 = vmatprep.subr.mxu0 %v2679_v1 }
  0xfb   :  { %2165 = vmatmul.mubr.msk.f32.vlgmr.msra.gmra.mrb[2].mxu0 %vm217_vm1, %v205_v22 }
  0xfc   :  { %2184 = vmatprep.mubr.msk.f32.mxu0 %vm2678_vm0, %v2679_v1 }
 0x1c6   :  { %v287_v24 = vpop.f32.mrb[0].mxu0 }
 0x1c7   :  { %v371_v25 = vpop.f32.mrb[0].mxu1  ;;  %v2144_v26 = vpop.f32.mrb[1].mxu0  ;;  %v288_v30 = vadd.f32 %v2033_v27, %v287_v24 }
 0x1c8   :  { %v2966_v28 = vadd.f32 %v2035_v23, %v371_v25  ;;  %v2155_v29 = vpop.f32.mrb[1].mxu1 }
 0x1ca   :  { %2168 = vmatpush3.xpose.msk.msra.mxu1 %vm465_vm2, %v2966_v28 }
 0x1cb   :  { %2172 = vmatprep.subr.mxu1 %v2679_v1 }
 0x1cd   :  { %2170 = vmatmul.mubr.msk.f32.vlgmr.msra.gmra.mrb[2].mxu1 %vm465_vm2, %v288_v30 }
 0x1ce   :  { %v455_v32 = vpop.f32.mrb[2].mxu0  ;;  %2174 = vmatprep.mubr.msk.f32.mxu1 %vm2678_vm0, %v2679_v1 }
 0x1cf   :  { %v2974_v33 = vadd.f32 %v2037_v31, %v455_v32  ;;  %v2166_v34 = vpop.f32.mrb[3].mxu0 }
 0x1d1   :  { %641 = vrot.lane.b32.xlu1 %v2974_v33, %s2680_s6  ;;  %2173 = vmatpush3.xpose.msk.msra.mxu1 %vm465_vm2, %v2974_v33 }
 0x1d2   :  { %2177 = vmatprep.subr.mxu1 %v2679_v1 }
 0x1d4   :  { %2175 = vmatmul.mubr.msk.f32.vlgmr.msra.gmra.mrb[4].mxu1 %vm465_vm2, %v288_v30 }
 0x1d5   :  { %800 = vrot.lane.b32.xlu1 %v2966_v28, %s2681_s2  ;;  %2179 = vmatprep.mubr.msk.f32.mxu1 %vm2678_vm0, %v2679_v1 }
 0x1d9   :  { %876 = vrot.lane.b32.xlu1 %v2974_v33, %s2681_s2 }
 0x1dd   :  { %1131 = vrot.lane.b32.xlu1 %v2966_v28, %s2682_s9 }
 0x1e1   :  { %1129 = vrot.lane.b32.xlu1 %v288_v30, %s2682_s9 }
 0x1e5   :  { %1207 = vrot.lane.b32.xlu1 %v2974_v33, %s2682_s9 }
 0x1e9   :  { %1462 = vrot.lane.b32.xlu1 %v2966_v28, %s2683_s29 }
 0x1ed   :  { %1460 = vrot.lane.b32.xlu1 %v288_v30, %s2683_s29 }
 0x243   :  { %v642_v35 = vpop.permute.xlu1 %641 }
 0x244   :  { %2178 = vmatpush3.msk.msra.mxu1 %vm646_vm3, %v642_v35 }
 0x245   :  { %2187 = vmatprep.subr.mxu1 %v2679_v1 }
 0x247   :  { %v801_v54 = vpop.permute.xlu1 %800 }
 0x24b   :  { %v877_v56 = vpop.permute.xlu1 %876 }
 0x24f   :  { %v1132_v57 = vpop.permute.xlu1 %1131 }
 0x253   :  { %v1130_v60 = vpop.permute.xlu1 %1129 }
 0x257   :  { %v1208_v62 = vpop.permute.xlu1 %1207 }
 0x25b   :  { %v1463_v63 = vpop.permute.xlu1 %1462 }
 0x25f   :  { %v1461_v2 = vpop.permute.xlu1 %1460 }
 0x2a0   :  { %v538_v40 = vpop.f32.mrb[2].mxu1 }
 0x2a1   :  { %v3005_v42 = vadd.f32 %v538_v40, %v2999_v38  ;;  %v2171_v43 = vpop.f32.mrb[3].mxu1 }
 0x2a3   :  { %v616_v44 = vsel %vm615_vm4, %v3005_v42, -inf }
 0x2a4   :  { %617 = vmax.xlane.f32.xlu0 %v616_v44 }
 0x2a7   :  { %v611_v46 = vpop.f32.mrb[4].mxu1 }
 0x2a8   :  { %v612_v47 = vadd.f32 %v611_v46, %v3009_v45  ;;  %v2176_v48 = vpop.f32.mrb[5].mxu1 }
 0x2aa   :  { %v620_v49 = vsel %vm619_vm5, %v612_v47, -inf }
 0x2ab   :  { %621 = vmax.xlane.f32.xlu0 %v620_v49 }
 0x2c1   :  { %798 = vrot.lane.b32.xlu0 %v288_v30, %s2681_s2 }
 0x2c5   :  { %1538 = vrot.lane.b32.xlu0 %v2974_v33, %s2683_s29 }
 0x331   :  { %v618_v50 = vpop.xlane.xlu0 %617 }
 0x338   :  { %v622_v51 = vpop.xlane.xlu0 %621 }
 0x339   :  { %v3015_v52 = vmax.f32 %v618_v50, %v622_v51 }
 0x33b   :  { %v628_v53 = vsub.f32 %v612_v47, %v3015_v52  ;;  %v624_v31 = vsub.f32 %v3005_v42, %v3015_v52 }
 0x33c   :  { %v799_v61 = vpop.permute.xlu0 %798 }
 0x33d   :  { %v629_v55 = vmul.f32 1.442695, %v628_v53  ;;  %v625_v32 = vmul.f32 1.442695, %v624_v31 }
 0x33f   :  { %2333 = vpow2.f32 %v629_v55 }
 0x340   :  { %v1539_v3 = vpop.permute.xlu0 %1538  ;;  %2335 = vpow2.f32 %v625_v32 }
 0x349   :  { %v2334_v58 = vpop.eup %2333 }
 0x34a   :  { %v3019_v59 = vmul.f32 %v2334_v58, %v3001_v39  ;;  %v2336_v37 = vpop.eup %2335 }
 0x34b   :  { %v3092_v44 = vmul.f32 %v2336_v37, %v2996_v36 }
 0x34c   :  { %2180 = vmatmul.mubr.msk.f32.vlgmr.msra.gmra.mrb[6].mxu1 %vm619_vm5, %v3019_v59 }
 0x34d   :  { %2188 = vmatpush3.xpose.msk.msra.mxu1 %vm465_vm2, %v801_v54  ;;  %2189 = vmatprep.mubr.msk.f32.mxu1 %vm2678_vm0, %v2679_v1 }
 0x34e   :  { %2192 = vmatprep.subr.mxu1 %v2679_v1 }
 0x350   :  { %2190 = vmatmul.mubr.msk.f32.vlgmr.msra.gmra.mrb[8].mxu1 %vm465_vm2, %v799_v61 }
 0x351   :  { %2193 = vmatpush3.xpose.msk.msra.mxu1 %vm465_vm2, %v877_v56  ;;  %2194 = vmatprep.mubr.msk.f32.mxu1 %vm2678_vm0, %v2679_v1 }
 0x352   :  { %2207 = vmatprep.subr.mxu1 %v2679_v1 }
 0x354   :  { %2195 = vmatmul.mubr.msk.f32.vlgmr.msra.gmra.mrb[10].mxu1 %vm465_vm2, %v799_v61 }
 0x355   :  { %2208 = vmatpush3.xpose.msk.msra.mxu1 %vm465_vm2, %v1132_v57  ;;  %2209 = vmatprep.mubr.msk.f32.mxu1 %vm2678_vm0, %v2679_v1 }
 0x356   :  { %2212 = vmatprep.subr.mxu1 %v2679_v1 }
 0x358   :  { %2210 = vmatmul.mubr.msk.f32.vlgmr.msra.gmra.mrb[12].mxu1 %vm465_vm2, %v1130_v60 }
 0x359   :  { %2213 = vmatpush3.xpose.msk.msra.mxu1 %vm465_vm2, %v1208_v62  ;;  %2214 = vmatprep.mubr.msk.f32.mxu1 %vm2678_vm0, %v2679_v1 }
 0x35a   :  { %2227 = vmatprep.subr.mxu1 %v2679_v1 }
 0x35c   :  { %2215 = vmatmul.mubr.msk.f32.vlgmr.msra.gmra.mrb[14].mxu1 %vm465_vm2, %v1130_v60 }
 0x35d   :  { %2228 = vmatpush3.xpose.msk.msra.mxu1 %vm465_vm2, %v1463_v63  ;;  %2229 = vmatprep.mubr.msk.f32.mxu1 %vm2678_vm0, %v2679_v1 }
 0x35e   :  { %2232 = vmatprep.subr.mxu1 %v2679_v1 }
 0x360   :  { %2230 = vmatmul.mubr.msk.f32.vlgmr.msra.gmra.mrb[16].mxu1 %vm465_vm2, %v1461_v2 }
 0x361   :  { %2233 = vmatpush3.xpose.msk.msra.mxu1 %vm465_vm2, %v1539_v3  ;;  %2234 = vmatprep.mubr.msk.f32.mxu1 %vm2678_vm0, %v2679_v1 }
 0x362   :  { %2287 = vmatprep.subr.bf16.mxu1 %v2677_v0 }
 0x364   :  { %2235 = vmatmul.mubr.msk.f32.vlgmr.msra.gmra.mrb[18].mxu1 %vm465_vm2, %v1461_v2 }
 0x365   :  { %2255 = vmatprep.mubr.msk.f32.mxu1 %vm2678_vm0, %v2679_v1 }
 0x41f   :  { %v3055_v4 = vpop.f32.mrb[6].mxu1 }
 0x420   :  { %v2181_v5 = vpop.f32.mrb[7].mxu1 }
 0x423   :  { %v872_v6 = vpop.f32.mrb[8].mxu1 }
 0x424   :  { %v873_v7 = vadd.f32 %v872_v6, %v2999_v38  ;;  %v2191_v8 = vpop.f32.mrb[9].mxu1 }
 0x426   :  { %v950_v9 = vsel %vm615_vm4, %v873_v7, -inf }
 0x427   :  { %951 = vmax.xlane.f32.xlu1 %v950_v9  ;;  %v946_v10 = vpop.f32.mrb[10].mxu1 }
 0x428   :  { %v947_v11 = vadd.f32 %v946_v10, %v3009_v45  ;;  %v2196_v12 = vpop.f32.mrb[11].mxu1 }
 0x42a   :  { %v953_v13 = vsel %vm619_vm5, %v947_v11, -inf }
 0x42b   :  { %954 = vmax.xlane.f32.xlu0 %v953_v13  ;;  %v1203_v14 = vpop.f32.mrb[12].mxu1 }
 0x42c   :  { %v2211_v15 = vpop.f32.mrb[13].mxu1  ;;  %v3066_v22 = vadd.f32 %v1203_v14, %v2999_v38 }
 0x42e   :  { %v1281_v26 = vsel %vm615_vm4, %v3066_v22, -inf }
 0x42f   :  { %v1277_v16 = vpop.f32.mrb[14].mxu1 }
 0x430   :  { %v2216_v17 = vpop.f32.mrb[15].mxu1  ;;  %v3069_v23 = vadd.f32 %v1277_v16, %v3009_v45 }
 0x432   :  { %v1284_v27 = vsel %vm619_vm5, %v3069_v23, -inf }
 0x433   :  { %v1534_v18 = vpop.f32.mrb[16].mxu1 }
 0x434   :  { %v2231_v19 = vpop.f32.mrb[17].mxu1  ;;  %v3072_v24 = vadd.f32 %v1534_v18, %v2999_v38 }
 0x436   :  { %v1612_v29 = vsel %vm615_vm4, %v3072_v24, -inf }
 0x437   :  { %v1608_v20 = vpop.f32.mrb[18].mxu1 }
 0x438   :  { %974 = vrot.lane.b32.xlu1 %v2974_v33, %s2684_s10  ;;  %v2236_v21 = vpop.f32.mrb[19].mxu1  ;;  %v3075_v25 = vadd.f32 %v1608_v20, %v3009_v45 }
 0x43a   :  { %v1615_v30 = vsel %vm619_vm5, %v3075_v25, -inf }
 0x43c   :  { %1051 = vrot.lane.b32.xlu1 %v2966_v28, %s2684_s10 }
 0x441   :  { %719 = vrot.lane.b32.xlu0 %v2966_v28, %s2680_s6  ;;  %s2625_s6 = scalar_lea.vmem %s2019_s5, 128 }
 0x442   :  { %p2626_p12 = scmp.ne.s32.totalorder %s2019_s5, %s2625_s6  ;;  %p2631_p0 = scmp.lt.s32.totalorder %s2625_s6, %s2625_s6 }
 0x444   :  { %p2632_p1 = por %p2631_p0, %p2630_p13 }
 0x446   :  { %p2633_p2 = pnand %p2632_p1, %p2626_p12 }
 0x460   :  { %1282 = vmax.xlane.f32.xlu0 %v1281_v26  ;;  %1285 = vmax.xlane.f32.xlu1 %v1284_v27 }
 0x464   :  { %1613 = vmax.xlane.f32.xlu0 %v1612_v29  ;;  %1616 = vmax.xlane.f32.xlu1 %v1615_v30 }
 0x475   :  { %1382 = vrot.lane.b32.xlu1 %v2966_v28, %s2685_s0 }
 0x479   :  { %1713 = vrot.lane.b32.xlu1 %v2966_v28, %s2686_s22 }
 0x47a   :  { %1305 = vrot.lane.b32.xlu0 %v2974_v33, %s2685_s0 }
 0x47e   :  { %1636 = vrot.lane.b32.xlu0 %v2974_v33, %s2686_s22 }
 0x4b4   :  { %v952_v34 = vpop.xlane.xlu1 %951 }
 0x4b8   :  { %v955_v35 = vpop.xlane.xlu0 %954  ;;  %v975_v33 = vpop.permute.xlu1 %974 }
 0x4b9   :  { %v956_v38 = vmax.f32 %v952_v34, %v955_v35 }
 0x4bb   :  { %v957_v40 = vsub.f32 %v873_v7, %v956_v38  ;;  %v961_v41 = vsub.f32 %v947_v11, %v956_v38 }
 0x4bc   :  { %v720_v43 = vpop.permute.xlu0 %719  ;;  %v1052_v50 = vpop.permute.xlu1 %1051 }
 0x4bd   :  { %v958_v28 = vmul.f32 1.442695, %v957_v40  ;;  %v962_v45 = vmul.f32 1.442695, %v961_v41  ;;  %2183 = vmatpush3.msk.msra.mxu0 %vm724_vm6, %v720_v43 }
 0x4be   :  { %2185 = vmatmul.mubr.msk.f32.vlgmr.msra.gmra.mrb[4].mxu0 %vm615_vm4, %v3092_v44  ;;  %2197 = vmatprep.subr.mxu0 %v2679_v1 }
 0x4bf   :  { %2337 = vpow2.f32 %v958_v28  ;;  %2198 = vmatpush3.msk.msra.mxu0 %vm646_vm3, %v975_v33  ;;  %2199 = vmatprep.mubr.msk.f32.mxu0 %vm2678_vm0, %v2679_v1 }
 0x4c0   :  { %2339 = vpow2.f32 %v962_v45  ;;  %2202 = vmatprep.subr.mxu0 %v2679_v1 }
 0x4c9   :  { %v2338_v42 = vpop.eup %2337 }
 0x4ca   :  { %v2340_v46 = vpop.eup %2339  ;;  %v960_v47 = vmul.f32 %v2338_v42, %v2996_v36 }
 0x4cb   :  { %v964_v48 = vmul.f32 %v2340_v46, %v3001_v39 }
 0x4cc   :  { %v965_v49 = vsel %vm615_vm4, %v960_v47, 0.0 }
 0x4cd   :  { %2200 = vmatmul.mubr.msk.f32.vlgmr.msra.gmra.mrb[6].mxu0 %vm619_vm5, %v964_v48  ;;  %966 = vadd.xlane.f32.xlu0 %v965_v49  ;;  %v968_v51 = vsel %vm619_vm5, %v964_v48, 0.0  ;;  %v1835_v48 = vld [vmem:[#allocation20] sm:$0xff]  ;;  %v1836_v49 = vld [vmem:[#allocation20 + $0x8] sm:$0xff] }
 0x4ce   :  { %2203 = vmatpush3.msk.msra.mxu0 %vm724_vm6, %v1052_v50  ;;  %969 = vadd.xlane.f32.xlu1 %v968_v51  ;;  %v2288_v50 = vpack.c.bf16 %v1836_v49, %v1835_v48  ;;  %v1837_v51 = vld [vmem:[#allocation20 + $0x10] sm:$0xff] }
 0x4cf   :  { %2204 = vmatprep.mubr.msk.f32.mxu0 %vm2678_vm0, %v2679_v1  ;;  %2217 = vmatprep.subr.mxu0 %v2679_v1 }
 0x4d0   :  { %2289 = vmatpush3.bf16.msra.mxu1 %v2288_v50 }
 0x4d1   :  { %2290 = vmatprep.subr.bf16.mxu1 %v2677_v0 }
 0x4d5   :  { %2205 = vmatmul.mubr.msk.f32.vlgmr.msra.gmra.mrb[6].mxu0 %vm615_vm4, %v960_v47 }
 0x4d6   :  { %2219 = vmatprep.mubr.msk.f32.mxu0 %vm2678_vm0, %v2679_v1 }
 0x4ed   :  { %v1283_v52 = vpop.xlane.xlu0 %1282  ;;  %v1286_v53 = vpop.xlane.xlu1 %1285 }
 0x4ee   :  { %v1287_v54 = vmax.f32 %v1283_v52, %v1286_v53  ;;  %v1838_v52 = vld [vmem:[#allocation20 + $0x18] sm:$0xff] }
 0x4ef   :  { %v2291_v53 = vpack.c.bf16 %v1838_v52, %v1837_v51 }
 0x4f0   :  { %v1288_v55 = vsub.f32 %v3066_v22, %v1287_v54  ;;  %v1292_v56 = vsub.f32 %v3069_v23, %v1287_v54 }
 0x4f1   :  { %v1614_v57 = vpop.xlane.xlu0 %1613  ;;  %v1617_v58 = vpop.xlane.xlu1 %1616  ;;  %2292 = vmatpush3.bf16.msra.mxu1 %v2291_v53 }
 0x4f2   :  { %v1289_v60 = vmul.f32 1.442695, %v1288_v55  ;;  %v1293_v61 = vmul.f32 1.442695, %v1292_v56  ;;  %v1618_v62 = vmax.f32 %v1614_v57, %v1617_v58 }
 0x4f4   :  { %2341 = vpow2.f32 %v1289_v60  ;;  %v1619_v63 = vsub.f32 %v3072_v24, %v1618_v62  ;;  %v1623_v2 = vsub.f32 %v3075_v25, %v1618_v62 }
 0x4f5   :  { %2343 = vpow2.f32 %v1293_v61  ;;  %v1306_v3 = vpop.permute.xlu0 %1305  ;;  %v1383_v13 = vpop.permute.xlu1 %1382 }
 0x4f6   :  { %v1620_v5 = vmul.f32 1.442695, %v1619_v63  ;;  %v1624_v6 = vmul.f32 1.442695, %v1623_v2  ;;  %2218 = vmatpush3.msk.msra.mxu0 %vm646_vm3, %v1306_v3 }
 0x4f7   :  { %2222 = vmatprep.subr.mxu0 %v2679_v1 }
 0x4f8   :  { %2345 = vpow2.f32 %v1620_v5 }
 0x4f9   :  { %2347 = vpow2.f32 %v1624_v6  ;;  %v1637_v20 = vpop.permute.xlu0 %1636  ;;  %v1714_v21 = vpop.permute.xlu1 %1713 }
 0x4fe   :  { %v2342_v7 = vpop.eup %2341 }
 0x4ff   :  { %v2344_v8 = vpop.eup %2343  ;;  %v1291_v9 = vmul.f32 %v2342_v7, %v2996_v36 }
 0x500   :  { %v1295_v10 = vmul.f32 %v2344_v8, %v3001_v39 }
 0x501   :  { %v1296_v11 = vsel %vm615_vm4, %v1291_v9, 0.0 }
 0x502   :  { %v2346_v12 = vpop.eup %2345  ;;  %2220 = vmatmul.mubr.msk.f32.vlgmr.msra.gmra.mrb[8].mxu0 %vm619_vm5, %v1295_v10  ;;  %1297 = vadd.xlane.f32.xlu0 %v1296_v11  ;;  %v1299_v16 = vsel %vm619_vm5, %v1295_v10, 0.0 }
 0x503   :  { %v2348_v14 = vpop.eup %2347  ;;  %2223 = vmatpush3.msk.msra.mxu0 %vm724_vm6, %v1383_v13  ;;  %v1622_v15 = vmul.f32 %v2346_v12, %v2996_v36  ;;  %2224 = vmatprep.mubr.msk.f32.mxu0 %vm2678_vm0, %v2679_v1  ;;  %v632_v36 = vsel %vm615_vm4, %v3092_v44, 0.0 }
 0x504   :  { %2237 = vmatprep.subr.mxu0 %v2679_v1  ;;  %v1626_v18 = vmul.f32 %v2348_v14, %v3001_v39  ;;  %v635_v39 = vsel %vm619_vm5, %v3019_v59, 0.0 }
 0x505   :  { %v1627_v17 = vsel %vm615_vm4, %v1622_v15, 0.0 }
 0x506   :  { %1300 = vadd.xlane.f32.xlu0 %v1299_v16  ;;  %1628 = vadd.xlane.f32.xlu1 %v1627_v17  ;;  %v1630_v19 = vsel %vm619_vm5, %v1626_v18, 0.0 }
 0x50a   :  { %2225 = vmatmul.mubr.msk.f32.vlgmr.msra.gmra.mrb[8].mxu0 %vm615_vm4, %v1291_v9  ;;  %1631 = vadd.xlane.f32.xlu0 %v1630_v19 }
 0x50b   :  { %2238 = vmatpush3.msk.msra.mxu0 %vm646_vm3, %v1637_v20  ;;  %633 = vadd.xlane.f32.xlu1 %v632_v36 }
 0x50c   :  { %2239 = vmatprep.mubr.msk.f32.mxu0 %vm2678_vm0, %v2679_v1  ;;  %2242 = vmatprep.subr.mxu0 %v2679_v1 }
 0x50e   :  { %2240 = vmatmul.mubr.msk.f32.vlgmr.msra.gmra.mrb[10].mxu0 %vm619_vm5, %v1626_v18  ;;  %636 = vadd.xlane.f32.xlu0 %v635_v39 }
 0x50f   :  { %2243 = vmatpush3.msk.msra.mxu0 %vm724_vm6, %v1714_v21  ;;  %2244 = vmatprep.mubr.msk.f32.mxu0 %vm2678_vm0, %v2679_v1 }
 0x510   :  { %2293 = vmatprep.subr.bf16.mxu0 %v2677_v0 }
 0x516   :  { %2245 = vmatmul.mubr.msk.f32.vlgmr.msra.gmra.mrb[10].mxu0 %vm615_vm4, %v1622_v15 }
 0x517   :  { %2266 = vmatprep.mubr.msk.f32.mxu0 %vm2678_vm0, %v2679_v1 }
 0x55a   :  { %v967_v24 = vpop.xlane.xlu0 %966 }
 0x55b   :  { %v970_v25 = vpop.xlane.xlu1 %969 }
 0x55c   :  { %v971_v26 = vadd.f32 %v970_v25, %v967_v24 }
 0x55e   :  { %v972_v27 = vadd.f32 1e-16, %v971_v26 }
 0x560   :  { %2349 = vrcp.f32 %v972_v27 }
 0x56a   :  { %v2350_v29 = vpop.eup %2349 }
 0x58f   :  { %v1298_v34 = vpop.xlane.xlu0 %1297 }
 0x591   :  { %v793_v22 = vpop.f32.mrb[4].mxu0 }
 0x592   :  { %v794_v23 = vadd.f32 %v793_v22, %v3055_v4  ;;  %v2186_v59 = vpop.f32.mrb[5].mxu0 }
 0x593   :  { %v1301_v35 = vpop.xlane.xlu0 %1300  ;;  %v1629_v40 = vpop.xlane.xlu1 %1628 }
 0x594   :  { %v1302_v37 = vadd.f32 %v1301_v35, %v1298_v34  ;;  %v1930_v34 = vld [vmem:[%s3204_s14 + $0x18] sm:$0xff] }
 0x596   :  { %v1303_v38 = vadd.f32 1e-16, %v1302_v37  ;;  %v2073_v37 = vld [vmem:[#allocation21] ss:$0 sm:$0xff] }
 0x597   :  { %v1632_v1 = vpop.xlane.xlu0 %1631 }
 0x598   :  { %2351 = vrcp.f32 %v1303_v38  ;;  %v1633_v4 = vadd.f32 %v1632_v1, %v1629_v40  ;;  %v634_v55 = vpop.xlane.xlu1 %633  ;;  %v1923_v38 = vld [vmem:[#allocation9] sm:$0xff]  ;;  %v1924_v1 = vstv %s1922_s28 }
 0x59a   :  { %v1634_v41 = vadd.f32 1e-16, %v1633_v4 }
 0x59b   :  { %v637_v54 = vpop.xlane.xlu0 %636 }
 0x59c   :  { %2353 = vrcp.f32 %v1634_v41  ;;  %v638_v56 = vadd.f32 %v637_v54, %v634_v55  ;;  %v1925_v41 = vmul.f32 %v1924_v1, %v1923_v38 }
 0x59e   :  { %v639_v57 = vadd.f32 1e-16, %v638_v56 }
 0x5a0   :  { %2355 = vrcp.f32 %v639_v57 }
 0x5a2   :  { %v2352_v43 = vpop.eup %2351 }
 0x5a6   :  { %v2354_v33 = vpop.eup %2353 }
 0x5a8   :  { %v1124_v30 = vpop.f32.mrb[6].mxu0 }
 0x5a9   :  { %v1128_v31 = vmul.f32 %v2350_v29, %v1124_v30  ;;  %v2206_v32 = vpop.f32.mrb[7].mxu0  ;;  %v1927_v29 = vld [vmem:[%s3204_s14] sm:$0xff]  ;;  %v1928_v30 = vld [vmem:[%s3204_s14 + $0x8] sm:$0xff] }
 0x5aa   :  { %v2356_v58 = vpop.eup %2355  ;;  %v1929_v32 = vld [vmem:[%s3204_s14 + $0x10] sm:$0xff] }
 0x5ab   :  { %1792 = vrot.lane.b32.xlu1 %v1128_v31, %s2669_s30  ;;  %s2688_s30 = smov 24   ;;  %v797_v61 = vmul.f32 %v2356_v58, %v794_v23  ;;  %v2294_v31 = vpack.c.bf16 %v1928_v30, %v1927_v29  ;;  %v2297_v35 = vpack.c.bf16 %v1930_v34, %v1929_v32 }
 0x5ad   :  { %2295 = vmatpush3.bf16.msra.mxu0 %v2294_v31 }
 0x5ae   :  { %2296 = vmatprep.subr.bf16.mxu0 %v2677_v0  ;;  %v1920_v0 = vstv %s3206_s16 }
 0x5b1   :  { %2298 = vmatpush3.bf16.msra.mxu0 %v2297_v35 }
 0x5dd   :  { %v1455_v44 = vpop.f32.mrb[8].mxu0 }
 0x5de   :  { %v1459_v28 = vmul.f32 %v2352_v43, %v1455_v44  ;;  %v2226_v45 = vpop.f32.mrb[9].mxu0 }
 0x5df   :  { %v2075_v45 = vld [vmem:[%s3205_s15] ss:$0 sm:$0xff] }
 0x5e0   :  { %1796 = vrot.lane.b32.xlu0 %v1459_v28, %s2687_s18 }
 0x5e9   :  { %v1786_v42 = vpop.f32.mrb[10].mxu0 }
 0x5ea   :  { %v1790_v46 = vmul.f32 %v2354_v33, %v1786_v42  ;;  %v2246_v47 = vpop.f32.mrb[11].mxu0 }
 0x5ec   :  { %1800 = vrot.lane.b32.xlu1 %v1790_v46, %s2688_s30 }
 0x61d   :  { %v1793_v60 = vpop.permute.xlu1 %1792 }
 0x61e   :  { %v1803_v63 = vsel %vm465_vm2, %v797_v61, %v1793_v60 }
 0x652   :  { %v1797_v62 = vpop.permute.xlu0 %1796 }
 0x653   :  { %v1805_v2 = vsel %vm1804_vm7, %v1803_v63, %v1797_v62 }
 0x65e   :  { %v1801_v3 = vpop.permute.xlu1 %1800 }
 0x65f   :  { %v1807_v5 = vsel %vm1806_vm8, %v1805_v2, %v1801_v3 }
 0x660   :  { %v1809_v6 = vmul.f32 0.70710677, %v1807_v5  ;;  %v1808_v25 = vmul.f32 0.5, %v1807_v5 }
 0x662   :  { %v1810_v7 = vand.u32 2147483647, %v1809_v6  ;;  %vm1830_vm9 = vcmp.ge.f32.partialorder %v1809_v6, 0.0 }
 0x664   :  { %v1811_v8 = vmul.f32 0.3275911, %v1810_v7  ;;  %v1824_v10 = vsub.f32 0.0, %v1810_v7 }
 0x666   :  { %v1812_v9 = vadd.f32 1.0, %v1811_v8  ;;  %v1825_v12 = vmul.f32 %v1824_v10, %v1810_v7 }
 0x668   :  { %2357 = vrcp.f32 %v1812_v9  ;;  %v1826_v15 = vmul.f32 1.442695, %v1825_v12 }
 0x66a   :  { %2359 = vpow2.f32 %v1826_v15 }
 0x672   :  { %v2358_v11 = vpop.eup %2357 }
 0x673   :  { %v1815_v13 = vmul.f32 1.0614054, %v2358_v11 }
 0x674   :  { %v2360_v21 = vpop.eup %2359 }
 0x675   :  { %v1816_v14 = vadd.f32 -1.4531521, %v1815_v13 }
 0x677   :  { %v1817_v16 = vmul.f32 %v2358_v11, %v1816_v14 }
 0x679   :  { %v1818_v17 = vadd.f32 1.4214138, %v1817_v16 }
 0x67b   :  { %v1819_v18 = vmul.f32 %v2358_v11, %v1818_v17 }
 0x67d   :  { %v1820_v19 = vadd.f32 -0.28449672, %v1819_v18 }
 0x67f   :  { %v1821_v20 = vmul.f32 %v2358_v11, %v1820_v19 }
 0x681   :  { %v1822_v36 = vadd.f32 0.2548296, %v1821_v20 }
 0x683   :  { %v1823_v39 = vmul.f32 %v2358_v11, %v1822_v36 }
 0x685   :  { %v1828_v22 = vmul.f32 %v2360_v21, %v1823_v39 }
 0x687   :  { %v1829_v23 = vsub.f32 1.0, %v1828_v22 }
 0x689   :  { %v1831_v59 = vsub.f32 0.0, %v1829_v23 }
 0x68b   :  { %v1832_v24 = vsel %vm1830_vm9, %v1829_v23, %v1831_v59 }
 0x68c   :  { %v1833_v26 = vadd.f32 1.0, %v1832_v24 }
 0x68e   :  { %v1834_v27 = vmul.f32 %v1833_v26, %v1808_v25 }
 0x690   :  { %2256 = vmatmul.mubr.msk.f32.vlgmr.msra.gmra.mrb[20].mxu1 %vm217_vm1, %v1834_v27 }
 0x763   :  { %v1915_v40 = vpop.f32.mrb[20].mxu1 }
 0x764   :  { %v1916_v4 = vadd.f32 %v2073_v37, %v1915_v40  ;;  %v2257_v43 = vpop.f32.mrb[21].mxu1 }
 0x766   :  { %v1921_v44 = vmul.f32 %v1920_v0, %v1916_v4 }
 0x768   :  { %v1926_v28 = vadd.f32 %v1925_v41, %v1921_v44 }
 0x76a   :  { %2267 = vmatmul.mubr.msk.f32.vlgmr.msra.gmra.mrb[12].mxu0 %vm217_vm1, %v1926_v28 }
 0x83d   :  { %v2007_v33 = vpop.f32.mrb[12].mxu0 }
 0x83e   :  { %v2008_v42 = vadd.f32 %v2075_v45, %v2007_v33  ;;  %v2268_v46 = vpop.f32.mrb[13].mxu0 }
 0x840   :  { %2011 = vst [vmem:[#allocation23] sm:$0xff] %v2008_v42 }
 0x841   :  { %2636 = shalt.err (!%p2633_p2)
}
 0x842   :  { %s2637_s9 = scalar_lea.hbm %s3207_s17, 128 }
 0x843   :  { %p2638_p3 = scmp.ne.s32.totalorder %s3207_s17, %s2637_s9  ;;  %p2641_p4 = scmp.lt.u32.totalorder %s2637_s9, %s3207_s17 }
 0x845   :  { %p2643_p5 = pnand %p2641_p4, %p2638_p3 }
 0x847   :  { %2646 = shalt.err (!%p2643_p5)
}
 0x848   :  { %2021 = dma.vmem_to_hbm [thread:$0]  %s2019_s5, 128, %s3207_s17, [#allocation5]  }
 0x849   :  { %2661 = dma.done.wait [#allocation5], 128  }
 0x84a   :  { %2662 = vsyncadd [#allocation5], 4294967168 }
 0x84b   :  { %2025 = vsyncpa [#allocation4], 1 }
 0x84c   :  { %2026 = vsyncpa [#allocation7], 1 }
 0x84d   :  { %2027 = vsyncpa [#allocation10], 1 }
 0x84e   :  { %2028 = vsyncpa [#allocation13], 1 }
 0x84f   :  { %2029 = vsyncpa [#allocation16], 1 }
 0x850   :  { %2030 = vsyncpa [#allocation19], 1 }
 0x851   :  { %2031 = vsyncpa [#allocation22], 1 }
 0x852   :  { %2032 = vsyncpa [#allocation5], 1 }

</bundles_post_ra>
